<compile_context>
chip_gen: v6e
topology: v6e:2x2x1
jax: 0.10.0
libtpu: 0.0.40
codegen_flags: <defaults>
</compile_context>

<pallas_src>
import functools

import jax
import jax.numpy as jnp
from jax.experimental import pallas as pl
from jax.experimental.pallas import tpu as pltpu

IN_FEATURES = 7
HIDDEN = 3

_LANE = 128
_MAX_BLOCK_ROWS = 1 << 16      # batch-major cap (rows per tile)
_MAX_BLOCK_COLS = 1 << 18      # feature-major cap (columns per tile)


def _sublane(dtype):
    """Minimum multiple for the second-to-last tile dim (8 for 32-bit, 16 for 16-bit)."""
    return 16 if jnp.dtype(dtype).itemsize == 2 else 8


def _vmem_capacity_bytes():
    """Per-TensorCore VMEM capacity; conservative fallback if the query is unavailable."""
    try:
        info = pltpu.get_tpu_info()
        for attr in ("vmem_capacity_bytes", "vmem_bytes"):
            cap = getattr(info, attr, None)
            if cap:
                return int(cap)
    except Exception:
        pass
    return 64 * 1024 * 1024            # v7x per-TC VMEM (smallest supported generation)


def _vmem_budget_bytes():
    # ~25% headroom below physical for Mosaic internal scratch + the (tiny) weight
    # buffers, capped at 96 MiB (comfortable on the 128 MiB v5e/v6e parts).
    return max(32 * 1024 * 1024,
               min(_vmem_capacity_bytes() * 3 // 4, 96 * 1024 * 1024))


def _pick_tile(batch, requested, per_unit_bytes, align, budget, cap):
    """Tile size along the batch axis, sized from the VMEM budget.

    If the whole batch fits in one tile, split it in two so the "parallel" grid
    axis has >=2 steps and both TensorCores get work on v7x megacore.
    """
    if requested is None:
        t = (budget * 4 // 5) // per_unit_bytes        # ~80% of budget for activation tiles
        t = max(align, (t // align) * align)
        t = min(t, cap)
    else:
        assert requested % align == 0 or requested >= batch, (
            f"tile size {requested} must be a multiple of {align} or >= batch {batch}")
        t = requested
    if batch <= t:
        if batch >= 2 * align:
            t = ((batch + 1) // 2 + align - 1) // align * align
        else:
            t = batch
    return t


def _cost(batch, act_bytes):
    flops = batch * (4 * IN_FEATURES * HIDDEN + 2 * (HIDDEN + IN_FEATURES))
    bytes_accessed = (act_bytes * 2 * batch * IN_FEATURES
                      + 4 * (2 * IN_FEATURES * HIDDEN + HIDDEN + IN_FEATURES))
    return pl.CostEstimate(flops=flops, transcendentals=0, bytes_accessed=bytes_accessed)


# ----------------------------------------------------------------------------
# Batch-major layout: x is (B, 7), exactly like PyTorch nn.Linear.
# ----------------------------------------------------------------------------
def _ae_kernel(x_ref, w1_ref, b1_ref, w2_ref, b2_ref, o_ref):
    # encoder: Linear(7 -> 3) + ReLU   (f32 accumulation; bf16 inputs are upcast)
    h = jnp.dot(x_ref[...], w1_ref[...], preferred_element_type=jnp.float32)
    h = jnp.maximum(h + b1_ref[...], 0.0)           # b1 (1, 3) broadcasts over rows
    # decoder: Linear(3 -> 7) + ReLU
    y = jnp.dot(h, w2_ref[...], preferred_element_type=jnp.float32)
    o_ref[...] = jnp.maximum(y + b2_ref[...], 0.0).astype(o_ref.dtype)


def autoencoder_forward(x, w1, b1, w2, b2, *, block_rows=None,
                        min_rows_for_pallas=4096):
    """x: (B, 7) f32 or bf16; returns (B, 7) in x.dtype.

    block_rows=None -> tile size derived from the per-generation VMEM budget.
    Batches below `min_rows_for_pallas` use a plain fused XLA path (launch/step
    overhead of pallas_call would dominate at that size).
    """
    B, F = x.shape
    assert F == IN_FEATURES, f"expected {IN_FEATURES} input features, got {F}"

    if B < min_rows_for_pallas:
        h = jnp.maximum(jnp.dot(x, w1, preferred_element_type=jnp.float32) + b1, 0.0)
        y = jnp.maximum(jnp.dot(h, w2, preferred_element_type=jnp.float32) + b2, 0.0)
        return y.astype(x.dtype)

    act_bytes = jnp.dtype(x.dtype).itemsize
    sub = _sublane(x.dtype)
    budget = _vmem_budget_bytes()
    # Per row of a (TB, 7) tile: 7 lanes pad to 128; input + output, double-buffered.
    per_row = _LANE * act_bytes * 2 * 2
    tb = _pick_tile(B, block_rows, per_row, sub, budget, _MAX_BLOCK_ROWS)
    grid = (pl.cdiv(B, tb),)

    return pl.pallas_call(
        _ae_kernel,
        out_shape=jax.ShapeDtypeStruct((B, IN_FEATURES), x.dtype),
        grid=grid,
        in_specs=[
            # batch-tiled activations (double-buffered by Pallas)
            pl.BlockSpec((tb, IN_FEATURES), lambda i: (i, 0)),
            # weights / biases: constant index_map -> VMEM-resident across steps
            pl.BlockSpec((IN_FEATURES, HIDDEN), lambda i: (0, 0)),
            pl.BlockSpec((1, HIDDEN), lambda i: (0, 0)),
            pl.BlockSpec((HIDDEN, IN_FEATURES), lambda i: (0, 0)),
            pl.BlockSpec((1, IN_FEATURES), lambda i: (0, 0)),
        ],
        out_specs=pl.BlockSpec((tb, IN_FEATURES), lambda i: (i, 0)),
        compiler_params=pltpu.CompilerParams(
            dimension_semantics=("parallel",),      # megacore on v7x
            vmem_limit_bytes=budget,                # per-generation budget
        ),
        cost_estimate=_cost(B, act_bytes),
    )(x, w1, b1, w2, b2)


# ----------------------------------------------------------------------------
# Feature-major layout: x is (7, B).  Batch lives on the lane axis -> lane-dense
# DMA, no masked 7-lane stores, ~16x more rows per VMEM byte.  Only for callers
# that keep this layout end-to-end (no wrapper transposes of the activations).
# ----------------------------------------------------------------------------
def _ae_kernel_fm(x_ref, w1t_ref, b1_ref, w2t_ref, b2_ref, o_ref):
    # x_ref: (7, TB); w1t: (3, 7); b1: (3, 1); w2t: (7, 3); b2: (7, 1)
    h = jnp.dot(w1t_ref[...], x_ref[...], preferred_element_type=jnp.float32)
    h = jnp.maximum(h + b1_ref[...], 0.0)
    y = jnp.dot(w2t_ref[...], h, preferred_element_type=jnp.float32)
    o_ref[...] = jnp.maximum(y + b2_ref[...], 0.0).astype(o_ref.dtype)


def autoencoder_forward_feature_major(x_fm, w1, b1, w2, b2, *, block_cols=None,
                                      min_cols_for_pallas=4096):
    """x_fm: (7, B) feature-major activations; returns (7, B) in x_fm.dtype."""
    F, B = x_fm.shape
    assert F == IN_FEATURES, f"expected {IN_FEATURES} input features, got {F}"

    # Transposing the tiny (7x3)/(3x7) weights and reshaping the biases is a few
    # dozen bytes -- negligible, unlike transposing the activations.
    w1t = jnp.transpose(w1)                       # (3, 7)
    w2t = jnp.transpose(w2)                       # (7, 3)
    b1c = jnp.reshape(b1, (HIDDEN, 1))
    b2c = jnp.reshape(b2, (IN_FEATURES, 1))

    if B < min_cols_for_pallas:
        h = jnp.maximum(jnp.dot(w1t, x_fm, preferred_element_type=jnp.float32) + b1c, 0.0)
        y = jnp.maximum(jnp.dot(w2t, h, preferred_element_type=jnp.float32) + b2c, 0.0)
        return y.astype(x_fm.dtype)

    act_bytes = jnp.dtype(x_fm.dtype).itemsize
    budget = _vmem_budget_bytes()
    # Per column of a (7, TB) tile: 7 sublanes pad to 8; input + output, double-buffered.
    per_col = 8 * act_bytes * 2 * 2
    tb = _pick_tile(B, block_cols, per_col, _LANE, budget, _MAX_BLOCK_COLS)
    grid = (pl.cdiv(B, tb),)

    return pl.pallas_call(
        _ae_kernel_fm,
        out_shape=jax.ShapeDtypeStruct((IN_FEATURES, B), x_fm.dtype),
        grid=grid,
        in_specs=[
            pl.BlockSpec((IN_FEATURES, tb), lambda i: (0, i)),
            pl.BlockSpec((HIDDEN, IN_FEATURES), lambda i: (0, 0)),
            pl.BlockSpec((HIDDEN, 1), lambda i: (0, 0)),
            pl.BlockSpec((IN_FEATURES, HIDDEN), lambda i: (0, 0)),
            pl.BlockSpec((IN_FEATURES, 1), lambda i: (0, 0)),
        ],
        out_specs=pl.BlockSpec((IN_FEATURES, tb), lambda i: (0, i)),
        compiler_params=pltpu.CompilerParams(
            dimension_semantics=("parallel",),
            vmem_limit_bytes=budget,
        ),
        cost_estimate=_cost(B, act_bytes),
    )(x_fm, w1t, b1c, w2t, b2c)


# ----------------------------------------------------------------------------
# Parameter init / reference
# ----------------------------------------------------------------------------
def init_params(key):
    """Deterministic init mimicking PyTorch nn.Linear (uniform +/- 1/sqrt(fan_in))."""
    k1, k2, k3, k4 = jax.random.split(key, 4)
    bound1 = 1.0 / jnp.sqrt(7.0)   # Linear(7, 3)
    bound2 = 1.0 / jnp.sqrt(3.0)   # Linear(3, 7)
    w1 = jax.random.uniform(k1, (IN_FEATURES, HIDDEN), jnp.float32, -bound1, bound1)
    b1 = jax.random.uniform(k2, (1, HIDDEN), jnp.float32, -bound1, bound1)
    w2 = jax.random.uniform(k3, (HIDDEN, IN_FEATURES), jnp.float32, -bound2, bound2)
    b2 = jax.random.uniform(k4, (1, IN_FEATURES), jnp.float32, -bound2, bound2)
    return w1, b1, w2, b2


def reference_forward(x, w1, b1, w2, b2):
    h = jnp.maximum(x @ w1 + b1, 0.0)
    return jnp.maximum(h @ w2 + b2, 0.0)


if __name__ == "__main__":
    key = jax.random.PRNGKey(0)
    kx1, kx2, kx3, kp = jax.random.split(key, 4)
    w1, b1, w2, b2 = init_params(kp)

    # --- batch-major Pallas path, explicit tiles -> grid=(4,) ---
    x_bm = jax.random.normal(kx1, (4096, IN_FEATURES), jnp.float32)
    ref_bm = reference_forward(x_bm, w1, b1, w2, b2)

    fwd_tiled = jax.jit(functools.partial(
        autoencoder_forward, block_rows=1024, min_rows_for_pallas=1))
    out = jax.block_until_ready(fwd_tiled(x_bm, w1, b1, w2, b2))
    assert out.shape == x_bm.shape
    assert jnp.allclose(out, ref_bm, atol=1e-5, rtol=1e-5), "mismatch (batch-major tiled)"

    # --- batch-major Pallas path, auto (VMEM-budget) tiling; split -> grid=(2,) ---
    out = jax.block_until_ready(jax.jit(autoencoder_forward)(x_bm, w1, b1, w2, b2))
    assert jnp.allclose(out, ref_bm, atol=1e-5, rtol=1e-5), "mismatch (batch-major auto)"

    # --- batch-major bf16 activations (f32 accumulation inside the kernel) ---
    x_bf = x_bm.astype(jnp.bfloat16)
    out_bf = jax.block_until_ready(fwd_tiled(x_bf, w1, b1, w2, b2))
    ref_bf = reference_forward(x_bf.astype(jnp.float32), w1, b1, w2, b2)
    assert out_bf.dtype == jnp.bfloat16
    assert jnp.allclose(out_bf.astype(jnp.float32), ref_bf, atol=2e-2, rtol=2e-2), \
        "mismatch (bf16)"

    # --- small-batch fast path (plain fused XLA, no pallas_call) ---
    x_small = jax.random.normal(kx2, (104, IN_FEATURES), jnp.float32)
    out_small = jax.block_until_ready(
        jax.jit(autoencoder_forward)(x_small, w1, b1, w2, b2))
    ref_small = reference_forward(x_small, w1, b1, w2, b2)
    assert jnp.allclose(out_small, ref_small, atol=1e-5, rtol=1e-5), "mismatch (small batch)"

    # --- feature-major (7, B) Pallas path, lane-dense tiles -> grid=(4,) ---
    x_fm = jax.random.normal(kx3, (IN_FEATURES, 4096), jnp.float32)
    fwd_fm = jax.jit(functools.partial(
        autoencoder_forward_feature_major, block_cols=1024, min_cols_for_pallas=1))
    out_fm = jax.block_until_ready(fwd_fm(x_fm, w1, b1, w2, b2))
    ref_fm = reference_forward(x_fm.T, w1, b1, w2, b2).T
    assert out_fm.shape == x_fm.shape
    assert jnp.allclose(out_fm, ref_fm, atol=1e-5, rtol=1e-5), "mismatch (feature-major)"

    print("KERNEL_OK")
</pallas_src>

<mosaic_0001>
module attributes {stable_mosaic.version = 11 : i64} {
  func.func @_ae_kernel(%arg0: i32, %arg1: memref<1024x7xf32, #tpu.memory_space<vmem>>, %arg2: memref<7x3xf32, #tpu.memory_space<vmem>>, %arg3: memref<1x3xf32, #tpu.memory_space<vmem>>, %arg4: memref<3x7xf32, #tpu.memory_space<vmem>>, %arg5: memref<1x7xf32, #tpu.memory_space<vmem>>, %arg6: memref<1024x7xf32, #tpu.memory_space<vmem>>) attributes {dimension_semantics = [#tpu.dimension_semantics<parallel>], iteration_bounds = array<i64: 4>, scalar_prefetch = 0 : i64, scratch_operands = 0 : i64, tpu.core_type = #tpu.core_type<tc>, window_params = [{transform_indices = @transform_0, window_bounds = array<i64: 1024, 7>}, {pipeline_mode = #tpu.pipeline_mode<synchronous>, transform_indices = @transform_1, window_bounds = array<i64: 7, 3>}, {pipeline_mode = #tpu.pipeline_mode<synchronous>, transform_indices = @transform_2, window_bounds = array<i64: 1, 3>}, {pipeline_mode = #tpu.pipeline_mode<synchronous>, transform_indices = @transform_3, window_bounds = array<i64: 3, 7>}, {pipeline_mode = #tpu.pipeline_mode<synchronous>, transform_indices = @transform_4, window_bounds = array<i64: 1, 7>}, {transform_indices = @transform_5, window_bounds = array<i64: 1024, 7>}]} {
    %c0 = arith.constant 0 : index
    %c0_0 = arith.constant 0 : index
    %0 = vector.load %arg1[%c0, %c0_0] : memref<1024x7xf32, #tpu.memory_space<vmem>>, vector<1024x7xf32>
    %c0_1 = arith.constant 0 : index
    %c0_2 = arith.constant 0 : index
    %1 = vector.load %arg2[%c0_1, %c0_2] : memref<7x3xf32, #tpu.memory_space<vmem>>, vector<7x3xf32>
    %cst = arith.constant dense<0.000000e+00> : vector<1024x3xf32>
    %2 = tpu.matmul %0, %1, %cst {dimension_numbers = #tpu.dot_dimension_numbers<[1], [0], [0], [1], [0, 0, 1, 1], [], []>} : vector<1024x7xf32>, vector<7x3xf32>, vector<1024x3xf32> -> vector<1024x3xf32>
    %c0_3 = arith.constant 0 : index
    %c0_4 = arith.constant 0 : index
    %3 = vector.load %arg3[%c0_3, %c0_4] : memref<1x3xf32, #tpu.memory_space<vmem>>, vector<1x3xf32>
    %4 = vector.broadcast %3 : vector<1x3xf32> to vector<1024x3xf32>
    %5 = arith.addf %2, %4 : vector<1024x3xf32>
    %cst_5 = arith.constant 0.000000e+00 : f32
    %6 = vector.broadcast %cst_5 : f32 to vector<1024x3xf32>
    %7 = arith.maximumf %5, %6 : vector<1024x3xf32>
    %c0_6 = arith.constant 0 : index
    %c0_7 = arith.constant 0 : index
    %8 = vector.load %arg4[%c0_6, %c0_7] : memref<3x7xf32, #tpu.memory_space<vmem>>, vector<3x7xf32>
    %cst_8 = arith.constant dense<0.000000e+00> : vector<1024x7xf32>
    %9 = tpu.matmul %7, %8, %cst_8 {dimension_numbers = #tpu.dot_dimension_numbers<[1], [0], [0], [1], [0, 0, 1, 1], [], []>} : vector<1024x3xf32>, vector<3x7xf32>, vector<1024x7xf32> -> vector<1024x7xf32>
    %c0_9 = arith.constant 0 : index
    %c0_10 = arith.constant 0 : index
    %10 = vector.load %arg5[%c0_9, %c0_10] : memref<1x7xf32, #tpu.memory_space<vmem>>, vector<1x7xf32>
    %11 = vector.broadcast %10 : vector<1x7xf32> to vector<1024x7xf32>
    %12 = arith.addf %9, %11 : vector<1024x7xf32>
    %cst_11 = arith.constant 0.000000e+00 : f32
    %13 = vector.broadcast %cst_11 : f32 to vector<1024x7xf32>
    %14 = arith.maximumf %12, %13 : vector<1024x7xf32>
    %c0_12 = arith.constant 0 : index
    %c0_13 = arith.constant 0 : index
    %15 = vector.load %arg6[%c0_12, %c0_13] : memref<1024x7xf32, #tpu.memory_space<vmem>>, vector<1024x7xf32>
    tpu.vector_store %arg6[%c0_12, %c0_13], %14 {strides = array<i32>} : memref<1024x7xf32, #tpu.memory_space<vmem>>, vector<1024x7xf32>,
    return
  }
  func.func @transform_0(%arg0: i32) -> (i32, i32) {
    %c0_i32 = arith.constant 0 : i32
    %c0_i32_0 = arith.constant 0 : i32
    return %arg0, %c0_i32 : i32, i32
  }
  func.func @transform_1(%arg0: i32) -> (i32, i32) {
    %c0_i32 = arith.constant 0 : i32
    %c0_i32_0 = arith.constant 0 : i32
    %c0_i32_1 = arith.constant 0 : i32
    return %c0_i32, %c0_i32_0 : i32, i32
  }
  func.func @transform_2(%arg0: i32) -> (i32, i32) {
    %c0_i32 = arith.constant 0 : i32
    %c0_i32_0 = arith.constant 0 : i32
    %c0_i32_1 = arith.constant 0 : i32
    return %c0_i32, %c0_i32_0 : i32, i32
  }
  func.func @transform_3(%arg0: i32) -> (i32, i32) {
    %c0_i32 = arith.constant 0 : i32
    %c0_i32_0 = arith.constant 0 : i32
    %c0_i32_1 = arith.constant 0 : i32
    return %c0_i32, %c0_i32_0 : i32, i32
  }
  func.func @transform_4(%arg0: i32) -> (i32, i32) {
    %c0_i32 = arith.constant 0 : i32
    %c0_i32_0 = arith.constant 0 : i32
    %c0_i32_1 = arith.constant 0 : i32
    return %c0_i32, %c0_i32_0 : i32, i32
  }
  func.func @transform_5(%arg0: i32) -> (i32, i32) {
    %c0_i32 = arith.constant 0 : i32
    %c0_i32_0 = arith.constant 0 : i32
    return %arg0, %c0_i32 : i32, i32
  }
}

</mosaic_0001>

<bundles_post_ra>
// kernel: autoencoder_forward.1
= control target key start
LH: loop header
LB: loop body
LE: loop exit
PB: predicated region body
PF: predicated region fallthrough
CT: control target
= control target key end

     0   :  { %s3965_s18 = smov 0   ;;  %s4915_s0 = inlined_call_operand.vmem [shape: f32[4096,7], index: 0, kind: input, shape index: {}]   ;;  %s4916_s1 = inlined_call_operand.vmem [shape: f32[7,3], index: 1, kind: input, shape index: {}]   ;;  %s4917_s2 = inlined_call_operand.vmem [shape: f32[1,3], index: 2, kind: input, shape index: {}]   ;;  %s4918_s3 = inlined_call_operand.vmem [shape: f32[3,7], index: 3, kind: input, shape index: {}]   ;;  %s4919_s4 = inlined_call_operand.vmem [shape: f32[1,7], index: 4, kind: input, shape index: {}]   ;;  %s4920_s5 = inlined_call_operand.vmem [shape: f32[4096,7], index: 5, kind: output, shape index: {}]  }
   0x1 LB: > { %s3000_s19 = sadd.s32 4294967295, %s3933_s18   ;;  %p3004_p0 = scmp.ge.s32.totalorder %s3933_s18, 1  ;;  %s3933_s18 = sphi %s3965_s18, %s15_s18  }
   0x2   : > { %p188_p1 = scmp.lt.s32.totalorder %s3933_s18, 5 }
   0x4   : > { %p189_p2 = pnand %p3004_p0, %p188_p1 }
   0x5   : > { %s3005_s22 = sshll.u32 (!%p189_p2), %s3000_s19, 7 }
   0x6   : > { %192 = sbr.rel (%p189_p2) target bundleno = 668 (0x29c), region = 40  ;;  %p217_p3 = scmp.lt.s32.totalorder (!%p189_p2), %s3005_s22, 511 }
   0xb   : > { %v356_v0 = vld [vmem:[%s4916_s1] sm:$0x7f]  ;;  %vm749_vm0 = vcmask 1046528   ;;  %s4922_s22 = smov (!%p217_p3, %s3005_s22), 511  ;;  %vm364_vm1 = vcmask 56320   ;;  %vm1979_vm2 = vcmask 1042432  }
   0xc   : > { %3529 = vmatprep.subr.msk.mxu0 %vm749_vm0, %v356_v0  ;;  %s3006_s23 = sshll.u32 %s4922_s22, 3  ;;  %v1586_v39 = vld [vmem:[%s4918_s3] sm:$0x7]  ;;  %vm1594_vm3 = vcmask 23552  }
   0xd   : > { %3530 = vmatpush3.msk.msra.mxu0 %vm749_vm0, %v356_v0  ;;  %s3984_s26 = scalar_lea.vmem %s4915_s0, %s3006_s23  ;;  %3723 = vmatprep.subr.msk.mxu1 %vm1979_vm2, %v1586_v39  ;;  %s4459_s10 = scalar_lea.vmem %s4920_s5, %s3006_s23 }
   0xe   : > { %v228_v1 = vld [vmem:[%s3984_s26] sm:$0xff]  ;;  %v229_v2 = vld [vmem:[%s3984_s26 + $0x8] sm:$0xff]  ;;  %v230_v3 = vld [vmem:[%s3984_s26 + $0x10] sm:$0xff]  ;;  %3724 = vmatpush3.msk.msra.mxu1 %vm1979_vm2, %v1586_v39 }
   0xf   : > { %3531 = vmatprep.mubr.msk.f32.mxu0 %vm364_vm1, %v228_v1  ;;  %v231_v4 = vld [vmem:[%s3984_s26 + $0x18] sm:$0xff]  ;;  %v232_v5 = vld [vmem:[%s3984_s26 + $0x20] sm:$0xff]  ;;  %v233_v6 = vld [vmem:[%s3984_s26 + $0x28] sm:$0xff] }
  0x10   : > { %3532 = vmatmul.mubr.msk.f32.vlgmr.msra.gmra.mxu0 %vm364_vm1, %v229_v2  ;;  %v234_v7 = vld [vmem:[%s3984_s26 + $0x30] sm:$0xff]  ;;  %v235_v8 = vld [vmem:[%s3984_s26 + $0x38] sm:$0xff]  ;;  %v236_v9 = vld [vmem:[%s3984_s26 + $0x40] sm:$0xff] }
  0x11   : > { %3534 = vmatprep.mubr.msk.f32.mxu0 %vm364_vm1, %v230_v3  ;;  %v237_v10 = vld [vmem:[%s3984_s26 + $0x48] sm:$0xff]  ;;  %v238_v11 = vld [vmem:[%s3984_s26 + $0x50] sm:$0xff]  ;;  %v239_v12 = vld [vmem:[%s3984_s26 + $0x58] sm:$0xff] }
  0x12   : > { %v240_v13 = vld [vmem:[%s3984_s26 + $0x60] sm:$0xff]  ;;  %v241_v14 = vld [vmem:[%s3984_s26 + $0x68] sm:$0xff]  ;;  %v242_v15 = vld [vmem:[%s3984_s26 + $0x70] sm:$0xff] }
  0x13   : > { %v243_v16 = vld [vmem:[%s3984_s26 + $0x78] sm:$0xff]  ;;  %v244_v17 = vld [vmem:[%s3984_s26 + $0x80] sm:$0xff]  ;;  %v245_v18 = vld [vmem:[%s3984_s26 + $0x88] sm:$0xff] }
  0x14   : > { %3535 = vmatmul.mubr.msk.f32.gmra.mxu0 %vm364_vm1, %v231_v4  ;;  %v246_v19 = vld [vmem:[%s3984_s26 + $0x90] sm:$0xff]  ;;  %v247_v20 = vld [vmem:[%s3984_s26 + $0x98] sm:$0xff]  ;;  %v248_v21 = vld [vmem:[%s3984_s26 + $0xa0] sm:$0xff] }
  0x15   : > { %3537 = vmatprep.mubr.msk.f32.mxu0 %vm364_vm1, %v232_v5  ;;  %v249_v22 = vld [vmem:[%s3984_s26 + $0xa8] sm:$0xff]  ;;  %v250_v23 = vld [vmem:[%s3984_s26 + $0xb0] sm:$0xff]  ;;  %v251_v24 = vld [vmem:[%s3984_s26 + $0xb8] sm:$0xff] }
  0x16   : > { %v252_v25 = vld [vmem:[%s3984_s26 + $0xc0] sm:$0xff]  ;;  %v253_v26 = vld [vmem:[%s3984_s26 + $0xc8] sm:$0xff]  ;;  %v254_v27 = vld [vmem:[%s3984_s26 + $0xd0] sm:$0xff] }
  0x17   : > { %v255_v28 = vld [vmem:[%s3984_s26 + $0xd8] sm:$0xff]  ;;  %v256_v29 = vld [vmem:[%s3984_s26 + $0xe0] sm:$0xff]  ;;  %v257_v30 = vld [vmem:[%s3984_s26 + $0xe8] sm:$0xff] }
  0x18   : > { %3538 = vmatmul.mubr.msk.f32.gmra.mxu0 %vm364_vm1, %v233_v6  ;;  %v258_v31 = vld [vmem:[%s3984_s26 + $0xf0] sm:$0xff]  ;;  %v259_v32 = vld [vmem:[%s3984_s26 + $0xf8] sm:$0xff]  ;;  %v260_v33 = vld [vmem:[%s3984_s26 + $0x100] sm:$0xff] }
  0x19   : > { %3540 = vmatprep.mubr.msk.f32.mxu0 %vm364_vm1, %v234_v7  ;;  %v261_v34 = vld [vmem:[%s3984_s26 + $0x108] sm:$0xff]  ;;  %v262_v35 = vld [vmem:[%s3984_s26 + $0x110] sm:$0xff]  ;;  %v263_v36 = vld [vmem:[%s3984_s26 + $0x118] sm:$0xff] }
  0x1a   : > { %v264_v37 = vld [vmem:[%s3984_s26 + $0x120] sm:$0xff]  ;;  %v265_v38 = vld [vmem:[%s3984_s26 + $0x128] sm:$0xff]  ;;  %v266_v40 = vld [vmem:[%s3984_s26 + $0x130] sm:$0xff] }
  0x1b   : > { %v267_v41 = vld [vmem:[%s3984_s26 + $0x138] sm:$0xff]  ;;  %v268_v42 = vld [vmem:[%s3984_s26 + $0x140] sm:$0xff]  ;;  %v269_v43 = vld [vmem:[%s3984_s26 + $0x148] sm:$0xff] }
  0x1c   : > { %3541 = vmatmul.mubr.msk.f32.gmra.mxu0 %vm364_vm1, %v235_v8  ;;  %v270_v44 = vld [vmem:[%s3984_s26 + $0x150] sm:$0xff]  ;;  %v271_v45 = vld [vmem:[%s3984_s26 + $0x158] sm:$0xff]  ;;  %v272_v46 = vld [vmem:[%s3984_s26 + $0x160] sm:$0xff] }
  0x1d   : > { %3543 = vmatprep.mubr.msk.f32.mxu0 %vm364_vm1, %v236_v9  ;;  %v273_v47 = vld [vmem:[%s3984_s26 + $0x168] sm:$0xff]  ;;  %v274_v48 = vld [vmem:[%s3984_s26 + $0x170] sm:$0xff]  ;;  %v275_v49 = vld [vmem:[%s3984_s26 + $0x178] sm:$0xff] }
  0x1e   : > { %v276_v50 = vld [vmem:[%s3984_s26 + $0x180] sm:$0xff]  ;;  %v277_v51 = vld [vmem:[%s3984_s26 + $0x188] sm:$0xff]  ;;  %v278_v52 = vld [vmem:[%s3984_s26 + $0x190] sm:$0xff] }
  0x1f   : > { %v279_v53 = vld [vmem:[%s3984_s26 + $0x198] sm:$0xff]  ;;  %v280_v54 = vld [vmem:[%s3984_s26 + $0x1a0] sm:$0xff]  ;;  %v281_v55 = vld [vmem:[%s3984_s26 + $0x1a8] sm:$0xff] }
  0x20   : > { %3544 = vmatmul.mubr.msk.f32.gmra.mxu0 %vm364_vm1, %v237_v10  ;;  %v282_v56 = vld [vmem:[%s3984_s26 + $0x1b0] sm:$0xff]  ;;  %v283_v57 = vld [vmem:[%s3984_s26 + $0x1b8] sm:$0xff]  ;;  %v284_v58 = vld [vmem:[%s3984_s26 + $0x1c0] sm:$0xff] }
  0x21   : > { %3546 = vmatprep.mubr.msk.f32.mxu0 %vm364_vm1, %v238_v11  ;;  %v285_v59 = vld [vmem:[%s3984_s26 + $0x1c8] sm:$0xff]  ;;  %v286_v60 = vld [vmem:[%s3984_s26 + $0x1d0] sm:$0xff]  ;;  %v287_v61 = vld [vmem:[%s3984_s26 + $0x1d8] sm:$0xff] }
  0x22   : > { %v288_v62 = vld [vmem:[%s3984_s26 + $0x1e0] sm:$0xff]  ;;  %v289_v63 = vld [vmem:[%s3984_s26 + $0x1e8] sm:$0xff]  ;;  %v290_v0 = vld [vmem:[%s3984_s26 + $0x1f0] sm:$0xff] }
  0x23   : > { %v291_v1 = vld [vmem:[%s3984_s26 + $0x1f8] sm:$0xff]  ;;  %v292_v2 = vld [vmem:[%s3984_s26 + $0x200] sm:$0xff]  ;;  %v293_v3 = vld [vmem:[%s3984_s26 + $0x208] sm:$0xff] }
  0x24   : > { %3547 = vmatmul.mubr.msk.f32.gmra.mxu0 %vm364_vm1, %v239_v12  ;;  %v294_v4 = vld [vmem:[%s3984_s26 + $0x210] sm:$0xff]  ;;  %v295_v5 = vld [vmem:[%s3984_s26 + $0x218] sm:$0xff]  ;;  %v296_v6 = vld [vmem:[%s3984_s26 + $0x220] sm:$0xff] }
  0x25   : > { %3549 = vmatprep.mubr.msk.f32.mxu0 %vm364_vm1, %v240_v13  ;;  %v297_v7 = vld [vmem:[%s3984_s26 + $0x228] sm:$0xff]  ;;  %v298_v8 = vld [vmem:[%s3984_s26 + $0x230] sm:$0xff]  ;;  %v299_v9 = vld [vmem:[%s3984_s26 + $0x238] sm:$0xff] }
  0x26   : > { %v300_v10 = vld [vmem:[%s3984_s26 + $0x240] sm:$0xff]  ;;  %v301_v11 = vld [vmem:[%s3984_s26 + $0x248] sm:$0xff]  ;;  %v302_v12 = vld [vmem:[%s3984_s26 + $0x250] sm:$0xff] }
  0x27   : > { %v303_v13 = vld [vmem:[%s3984_s26 + $0x258] sm:$0xff] }
  0x28   : > { %3550 = vmatmul.mubr.msk.f32.gmra.mxu0 %vm364_vm1, %v241_v14  ;;  %v304_v14 = vld [vmem:[%s3984_s26 + $0x260] sm:$0xff]  ;;  %v327_v39 = vld [vmem:[%s3984_s26 + $0x318] sm:$0xff] }
  0x29   : > { %3552 = vmatprep.mubr.msk.f32.mxu0 %vm364_vm1, %v242_v15  ;;  %v305_v15 = vld [vmem:[%s3984_s26 + $0x268] sm:$0xff] }
  0x2c   : > { %3553 = vmatmul.mubr.msk.f32.gmra.mxu0 %vm364_vm1, %v243_v16  ;;  %v306_v16 = vld [vmem:[%s3984_s26 + $0x270] sm:$0xff] }
  0x2d   : > { %3555 = vmatprep.mubr.msk.f32.mxu0 %vm364_vm1, %v244_v17  ;;  %v307_v17 = vld [vmem:[%s3984_s26 + $0x278] sm:$0xff] }
  0x30   : > { %3556 = vmatmul.mubr.msk.f32.gmra.mxu0 %vm364_vm1, %v245_v18  ;;  %v308_v18 = vld [vmem:[%s3984_s26 + $0x280] sm:$0xff] }
  0x31   : > { %3558 = vmatprep.mubr.msk.f32.mxu0 %vm364_vm1, %v246_v19  ;;  %v309_v19 = vld [vmem:[%s3984_s26 + $0x288] sm:$0xff] }
  0x34   : > { %3559 = vmatmul.mubr.msk.f32.gmra.mxu0 %vm364_vm1, %v247_v20  ;;  %v310_v20 = vld [vmem:[%s3984_s26 + $0x290] sm:$0xff] }
  0x35   : > { %3561 = vmatprep.mubr.msk.f32.mxu0 %vm364_vm1, %v248_v21  ;;  %v311_v21 = vld [vmem:[%s3984_s26 + $0x298] sm:$0xff] }
  0x38   : > { %3562 = vmatmul.mubr.msk.f32.gmra.mxu0 %vm364_vm1, %v249_v22  ;;  %v312_v22 = vld [vmem:[%s3984_s26 + $0x2a0] sm:$0xff] }
  0x39   : > { %3564 = vmatprep.mubr.msk.f32.mxu0 %vm364_vm1, %v250_v23  ;;  %v313_v23 = vld [vmem:[%s3984_s26 + $0x2a8] sm:$0xff] }
  0x3c   : > { %3565 = vmatmul.mubr.msk.f32.gmra.mxu0 %vm364_vm1, %v251_v24  ;;  %v314_v24 = vld [vmem:[%s3984_s26 + $0x2b0] sm:$0xff] }
  0x3d   : > { %3567 = vmatprep.mubr.msk.f32.mxu0 %vm364_vm1, %v252_v25  ;;  %v315_v25 = vld [vmem:[%s3984_s26 + $0x2b8] sm:$0xff] }
  0x40   : > { %3568 = vmatmul.mubr.msk.f32.gmra.mxu0 %vm364_vm1, %v253_v26  ;;  %v316_v26 = vld [vmem:[%s3984_s26 + $0x2c0] sm:$0xff] }
  0x41   : > { %3570 = vmatprep.mubr.msk.f32.mxu0 %vm364_vm1, %v254_v27  ;;  %v317_v27 = vld [vmem:[%s3984_s26 + $0x2c8] sm:$0xff] }
  0x44   : > { %3571 = vmatmul.mubr.msk.f32.gmra.mxu0 %vm364_vm1, %v255_v28  ;;  %v318_v28 = vld [vmem:[%s3984_s26 + $0x2d0] sm:$0xff] }
  0x45   : > { %3573 = vmatprep.mubr.msk.f32.mxu0 %vm364_vm1, %v256_v29  ;;  %v319_v29 = vld [vmem:[%s3984_s26 + $0x2d8] sm:$0xff] }
  0x48   : > { %3574 = vmatmul.mubr.msk.f32.gmra.mxu0 %vm364_vm1, %v257_v30  ;;  %v320_v30 = vld [vmem:[%s3984_s26 + $0x2e0] sm:$0xff] }
  0x49   : > { %3576 = vmatprep.mubr.msk.f32.mxu0 %vm364_vm1, %v258_v31  ;;  %v321_v31 = vld [vmem:[%s3984_s26 + $0x2e8] sm:$0xff] }
  0x4c   : > { %3577 = vmatmul.mubr.msk.f32.gmra.mxu0 %vm364_vm1, %v259_v32  ;;  %v322_v32 = vld [vmem:[%s3984_s26 + $0x2f0] sm:$0xff] }
  0x4d   : > { %3579 = vmatprep.mubr.msk.f32.mxu0 %vm364_vm1, %v260_v33  ;;  %v323_v33 = vld [vmem:[%s3984_s26 + $0x2f8] sm:$0xff] }
  0x50   : > { %3580 = vmatmul.mubr.msk.f32.gmra.mxu0 %vm364_vm1, %v261_v34  ;;  %v324_v34 = vld [vmem:[%s3984_s26 + $0x300] sm:$0xff] }
  0x51   : > { %3582 = vmatprep.mubr.msk.f32.mxu0 %vm364_vm1, %v262_v35  ;;  %v325_v35 = vld [vmem:[%s3984_s26 + $0x308] sm:$0xff] }
  0x54   : > { %3583 = vmatmul.mubr.msk.f32.gmra.mxu0 %vm364_vm1, %v263_v36  ;;  %v326_v36 = vld [vmem:[%s3984_s26 + $0x310] sm:$0xff] }
  0x55   : > { %3585 = vmatprep.mubr.msk.f32.mxu0 %vm364_vm1, %v264_v37  ;;  %v4188_v37 = vld [vmem:[%s4917_s2] ss:$0 sm:$0xff] }
  0x58   : > { %3586 = vmatmul.mubr.msk.f32.gmra.mxu0 %vm364_vm1, %v265_v38 }
  0x59   : > { %3588 = vmatprep.mubr.msk.f32.mxu0 %vm364_vm1, %v266_v40 }
  0x5c   : > { %3589 = vmatmul.mubr.msk.f32.gmra.mxu0 %vm364_vm1, %v267_v41 }
  0x5d   : > { %3591 = vmatprep.mubr.msk.f32.mxu0 %vm364_vm1, %v268_v42  ;;  %v328_v42 = vld [vmem:[%s3984_s26 + $0x320] sm:$0xff] }
  0x60   : > { %3592 = vmatmul.mubr.msk.f32.gmra.mxu0 %vm364_vm1, %v269_v43 }
  0x61   : > { %3594 = vmatprep.mubr.msk.f32.mxu0 %vm364_vm1, %v270_v44 }
  0x64   : > { %3595 = vmatmul.mubr.msk.f32.gmra.mxu0 %vm364_vm1, %v271_v45 }
  0x65   : > { %3597 = vmatprep.mubr.msk.f32.mxu0 %vm364_vm1, %v272_v46  ;;  %v329_v46 = vld [vmem:[%s3984_s26 + $0x328] sm:$0xff] }
  0x68   : > { %3598 = vmatmul.mubr.msk.f32.gmra.mxu0 %vm364_vm1, %v273_v47 }
  0x69   : > { %3600 = vmatprep.mubr.msk.f32.mxu0 %vm364_vm1, %v274_v48 }
  0x6c   : > { %3601 = vmatmul.mubr.msk.f32.gmra.mxu0 %vm364_vm1, %v275_v49 }
  0x6d   : > { %3603 = vmatprep.mubr.msk.f32.mxu0 %vm364_vm1, %v276_v50  ;;  %v330_v50 = vld [vmem:[%s3984_s26 + $0x330] sm:$0xff] }
  0x70   : > { %3604 = vmatmul.mubr.msk.f32.gmra.mxu0 %vm364_vm1, %v277_v51 }
  0x71   : > { %3606 = vmatprep.mubr.msk.f32.mxu0 %vm364_vm1, %v278_v52 }
  0x74   : > { %3607 = vmatmul.mubr.msk.f32.gmra.mxu0 %vm364_vm1, %v279_v53 }
  0x75   : > { %3609 = vmatprep.mubr.msk.f32.mxu0 %vm364_vm1, %v280_v54  ;;  %v331_v54 = vld [vmem:[%s3984_s26 + $0x338] sm:$0xff] }
  0x78   : > { %3610 = vmatmul.mubr.msk.f32.gmra.mxu0 %vm364_vm1, %v281_v55 }
  0x79   : > { %3612 = vmatprep.mubr.msk.f32.mxu0 %vm364_vm1, %v282_v56 }
  0x7c   : > { %3613 = vmatmul.mubr.msk.f32.gmra.mxu0 %vm364_vm1, %v283_v57 }
  0x7d   : > { %3615 = vmatprep.mubr.msk.f32.mxu0 %vm364_vm1, %v284_v58  ;;  %v332_v58 = vld [vmem:[%s3984_s26 + $0x340] sm:$0xff] }
  0x80   : > { %3616 = vmatmul.mubr.msk.f32.gmra.mxu0 %vm364_vm1, %v285_v59 }
  0x81   : > { %3618 = vmatprep.mubr.msk.f32.mxu0 %vm364_vm1, %v286_v60 }
  0x84   : > { %3619 = vmatmul.mubr.msk.f32.gmra.mxu0 %vm364_vm1, %v287_v61 }
  0x85   : > { %3621 = vmatprep.mubr.msk.f32.mxu0 %vm364_vm1, %v288_v62  ;;  %v333_v62 = vld [vmem:[%s3984_s26 + $0x348] sm:$0xff] }
  0x88   : > { %3622 = vmatmul.mubr.msk.f32.gmra.mxu0 %vm364_vm1, %v289_v63 }
  0x89   : > { %3624 = vmatprep.mubr.msk.f32.mxu0 %vm364_vm1, %v290_v0 }
  0x8c   : > { %3625 = vmatmul.mubr.msk.f32.gmra.mxu0 %vm364_vm1, %v291_v1 }
  0x8d   : > { %3627 = vmatprep.mubr.msk.f32.mxu0 %vm364_vm1, %v292_v2  ;;  %v334_v2 = vld [vmem:[%s3984_s26 + $0x350] sm:$0xff] }
  0x90   : > { %3628 = vmatmul.mubr.msk.f32.gmra.mxu0 %vm364_vm1, %v293_v3 }
  0x91   : > { %3630 = vmatprep.mubr.msk.f32.mxu0 %vm364_vm1, %v294_v4 }
  0x94   : > { %3631 = vmatmul.mubr.msk.f32.gmra.mxu0 %vm364_vm1, %v295_v5 }
  0x95   : > { %3633 = vmatprep.mubr.msk.f32.mxu0 %vm364_vm1, %v296_v6  ;;  %v335_v6 = vld [vmem:[%s3984_s26 + $0x358] sm:$0xff] }
  0x98   : > { %3634 = vmatmul.mubr.msk.f32.gmra.mxu0 %vm364_vm1, %v297_v7 }
  0x99   : > { %3636 = vmatprep.mubr.msk.f32.mxu0 %vm364_vm1, %v298_v8 }
  0x9c   : > { %3637 = vmatmul.mubr.msk.f32.gmra.mxu0 %vm364_vm1, %v299_v9 }
  0x9d   : > { %3639 = vmatprep.mubr.msk.f32.mxu0 %vm364_vm1, %v300_v10  ;;  %v336_v10 = vld [vmem:[%s3984_s26 + $0x360] sm:$0xff] }
  0xa0   : > { %3640 = vmatmul.mubr.msk.f32.gmra.mxu0 %vm364_vm1, %v301_v11 }
  0xa1   : > { %3642 = vmatprep.mubr.msk.f32.mxu0 %vm364_vm1, %v302_v12 }
  0xa4   : > { %3643 = vmatmul.mubr.msk.f32.gmra.mxu0 %vm364_vm1, %v303_v13 }
  0xa5   : > { %3645 = vmatprep.mubr.msk.f32.mxu0 %vm364_vm1, %v304_v14  ;;  %v337_v14 = vld [vmem:[%s3984_s26 + $0x368] sm:$0xff] }
  0xa8   : > { %3646 = vmatmul.mubr.msk.f32.gmra.mxu0 %vm364_vm1, %v305_v15 }
  0xa9   : > { %3648 = vmatprep.mubr.msk.f32.mxu0 %vm364_vm1, %v306_v16 }
  0xac   : > { %3649 = vmatmul.mubr.msk.f32.gmra.mxu0 %vm364_vm1, %v307_v17 }
  0xad   : > { %3651 = vmatprep.mubr.msk.f32.mxu0 %vm364_vm1, %v308_v18  ;;  %v338_v18 = vld [vmem:[%s3984_s26 + $0x370] sm:$0xff] }
  0xb0   : > { %3652 = vmatmul.mubr.msk.f32.gmra.mxu0 %vm364_vm1, %v309_v19 }
  0xb1   : > { %3654 = vmatprep.mubr.msk.f32.mxu0 %vm364_vm1, %v310_v20 }
  0xb4   : > { %3655 = vmatmul.mubr.msk.f32.gmra.mxu0 %vm364_vm1, %v311_v21 }
  0xb5   : > { %3657 = vmatprep.mubr.msk.f32.mxu0 %vm364_vm1, %v312_v22  ;;  %v339_v22 = vld [vmem:[%s3984_s26 + $0x378] sm:$0xff] }
  0xb8   : > { %3658 = vmatmul.mubr.msk.f32.gmra.mxu0 %vm364_vm1, %v313_v23 }
  0xb9   : > { %3660 = vmatprep.mubr.msk.f32.mxu0 %vm364_vm1, %v314_v24 }
  0xbc   : > { %3661 = vmatmul.mubr.msk.f32.gmra.mxu0 %vm364_vm1, %v315_v25 }
  0xbd   : > { %3663 = vmatprep.mubr.msk.f32.mxu0 %vm364_vm1, %v316_v26  ;;  %v340_v26 = vld [vmem:[%s3984_s26 + $0x380] sm:$0xff] }
  0xc0   : > { %3664 = vmatmul.mubr.msk.f32.gmra.mxu0 %vm364_vm1, %v317_v27 }
  0xc1   : > { %3666 = vmatprep.mubr.msk.f32.mxu0 %vm364_vm1, %v318_v28 }
  0xc4   : > { %3667 = vmatmul.mubr.msk.f32.gmra.mxu0 %vm364_vm1, %v319_v29 }
  0xc5   : > { %3669 = vmatprep.mubr.msk.f32.mxu0 %vm364_vm1, %v320_v30  ;;  %v341_v30 = vld [vmem:[%s3984_s26 + $0x388] sm:$0xff] }
  0xc8   : > { %3670 = vmatmul.mubr.msk.f32.gmra.mxu0 %vm364_vm1, %v321_v31 }
  0xc9   : > { %3672 = vmatprep.mubr.msk.f32.mxu0 %vm364_vm1, %v322_v32 }
  0xcc   : > { %3673 = vmatmul.mubr.msk.f32.gmra.mxu0 %vm364_vm1, %v323_v33 }
  0xcd   : > { %3675 = vmatprep.mubr.msk.f32.mxu0 %vm364_vm1, %v324_v34  ;;  %v342_v34 = vld [vmem:[%s3984_s26 + $0x390] sm:$0xff] }
  0xd0   : > { %v3533_v38 = vpop.f32.mrf.mxu0  ;;  %3676 = vmatmul.mubr.msk.f32.gmra.mxu0 %vm364_vm1, %v325_v35 }
  0xd1   : > { %3678 = vmatprep.mubr.msk.f32.mxu0 %vm364_vm1, %v326_v36  ;;  %v825_v40 = vadd.f32 %v3533_v38, %v4188_v37 }
  0xd2   : > { %v819_v41 = vpop.f32.mrf.mxu0 }
  0xd3   : > { %v820_v43 = vadd.f32 %v4188_v37, %v819_v41  ;;  %v1459_v47 = vmax.f32 %v825_v40, 0.0 }
  0xd4   : > { %v3536_v44 = vpop.f32.mrf.mxu0  ;;  %3679 = vmatmul.mubr.msk.f32.gmra.mxu0 %vm364_vm1, %v327_v39  ;;  %v343_v39 = vld [vmem:[%s3984_s26 + $0x398] sm:$0xff] }
  0xd5   : > { %3681 = vmatprep.mubr.msk.f32.mxu0 %vm364_vm1, %v328_v42  ;;  %v1458_v45 = vmax.f32 %v820_v43, 0.0  ;;  %v835_v48 = vadd.f32 %v3536_v44, %v4188_v37  ;;  %v344_v43 = vld [vmem:[%s3984_s26 + $0x3a0] sm:$0xff] }
  0xd6   : > { %v829_v49 = vpop.f32.mrf.mxu0 }
  0xd7   : > { %v830_v51 = vadd.f32 %v4188_v37, %v829_v49  ;;  %3725 = vmatprep.mubr.msk.f32.mxu1 %vm1594_vm3, %v1458_v45  ;;  %v1461_v55 = vmax.f32 %v835_v48, 0.0 }
  0xd8   : > { %v3539_v52 = vpop.f32.mrf.mxu0  ;;  %3682 = vmatmul.mubr.msk.f32.gmra.mxu0 %vm364_vm1, %v329_v46  ;;  %3726 = vmatmul.mubr.msk.f32.vlgmr.msra.gmra.mxu1 %vm1594_vm3, %v1459_v47  ;;  %v345_v47 = vld [vmem:[%s3984_s26 + $0x3a8] sm:$0xff] }
  0xd9   : > { %v1460_v53 = vmax.f32 %v830_v51, 0.0  ;;  %3684 = vmatprep.mubr.msk.f32.mxu0 %vm364_vm1, %v330_v50  ;;  %v845_v56 = vadd.f32 %v3539_v52, %v4188_v37  ;;  %v346_v51 = vld [vmem:[%s3984_s26 + $0x3b0] sm:$0xff] }
  0xda   : > { %v839_v57 = vpop.f32.mrf.mxu0 }
  0xdb   : > { %v840_v59 = vadd.f32 %v4188_v37, %v839_v57  ;;  %3728 = vmatprep.mubr.msk.f32.mxu1 %vm1594_vm3, %v1460_v53  ;;  %v1463_v63 = vmax.f32 %v845_v56, 0.0 }
  0xdc   : > { %v3542_v60 = vpop.f32.mrf.mxu0  ;;  %3685 = vmatmul.mubr.msk.f32.gmra.mxu0 %vm364_vm1, %v331_v54  ;;  %3729 = vmatmul.mubr.msk.f32.gmra.mxu1 %vm1594_vm3, %v1461_v55  ;;  %v347_v55 = vld [vmem:[%s3984_s26 + $0x3b8] sm:$0xff] }
  0xdd   : > { %v1462_v61 = vmax.f32 %v840_v59, 0.0  ;;  %3687 = vmatprep.mubr.msk.f32.mxu0 %vm364_vm1, %v332_v58  ;;  %v855_v0 = vadd.f32 %v3542_v60, %v4188_v37  ;;  %v348_v59 = vld [vmem:[%s3984_s26 + $0x3c0] sm:$0xff] }
  0xde   : > { %v849_v1 = vpop.f32.mrf.mxu0 }
  0xdf   : > { %v850_v3 = vadd.f32 %v4188_v37, %v849_v1  ;;  %3731 = vmatprep.mubr.msk.f32.mxu1 %vm1594_vm3, %v1462_v61  ;;  %v1465_v7 = vmax.f32 %v855_v0, 0.0 }
  0xe0   : > { %v3545_v4 = vpop.f32.mrf.mxu0  ;;  %3688 = vmatmul.mubr.msk.f32.gmra.mxu0 %vm364_vm1, %v333_v62  ;;  %3732 = vmatmul.mubr.msk.f32.gmra.mxu1 %vm1594_vm3, %v1463_v63  ;;  %v349_v63 = vld [vmem:[%s3984_s26 + $0x3c8] sm:$0xff] }
  0xe1   : > { %v1464_v5 = vmax.f32 %v850_v3, 0.0  ;;  %3690 = vmatprep.mubr.msk.f32.mxu0 %vm364_vm1, %v334_v2  ;;  %v865_v8 = vadd.f32 %v3545_v4, %v4188_v37  ;;  %v350_v3 = vld [vmem:[%s3984_s26 + $0x3d0] sm:$0xff] }
  0xe2   : > { %v859_v9 = vpop.f32.mrf.mxu0 }
  0xe3   : > { %v860_v11 = vadd.f32 %v4188_v37, %v859_v9  ;;  %3734 = vmatprep.mubr.msk.f32.mxu1 %vm1594_vm3, %v1464_v5  ;;  %v1467_v15 = vmax.f32 %v865_v8, 0.0 }
  0xe4   : > { %v3548_v12 = vpop.f32.mrf.mxu0  ;;  %3691 = vmatmul.mubr.msk.f32.gmra.mxu0 %vm364_vm1, %v335_v6  ;;  %3735 = vmatmul.mubr.msk.f32.gmra.mxu1 %vm1594_vm3, %v1465_v7  ;;  %v351_v7 = vld [vmem:[%s3984_s26 + $0x3d8] sm:$0xff] }
  0xe5   : > { %v1466_v13 = vmax.f32 %v860_v11, 0.0  ;;  %3693 = vmatprep.mubr.msk.f32.mxu0 %vm364_vm1, %v336_v10  ;;  %v875_v16 = vadd.f32 %v3548_v12, %v4188_v37  ;;  %v352_v11 = vld [vmem:[%s3984_s26 + $0x3e0] sm:$0xff] }
  0xe6   : > { %v869_v17 = vpop.f32.mrf.mxu0 }
  0xe7   : > { %v870_v19 = vadd.f32 %v4188_v37, %v869_v17  ;;  %3737 = vmatprep.mubr.msk.f32.mxu1 %vm1594_vm3, %v1466_v13  ;;  %v1469_v23 = vmax.f32 %v875_v16, 0.0 }
  0xe8   : > { %v3551_v20 = vpop.f32.mrf.mxu0  ;;  %3694 = vmatmul.mubr.msk.f32.gmra.mxu0 %vm364_vm1, %v337_v14  ;;  %3738 = vmatmul.mubr.msk.f32.gmra.mxu1 %vm1594_vm3, %v1467_v15  ;;  %v353_v15 = vld [vmem:[%s3984_s26 + $0x3e8] sm:$0xff] }
  0xe9   : > { %v1468_v21 = vmax.f32 %v870_v19, 0.0  ;;  %3696 = vmatprep.mubr.msk.f32.mxu0 %vm364_vm1, %v338_v18  ;;  %v885_v24 = vadd.f32 %v3551_v20, %v4188_v37  ;;  %v354_v19 = vld [vmem:[%s3984_s26 + $0x3f0] sm:$0xff] }
  0xea   : > { %v879_v25 = vpop.f32.mrf.mxu0 }
  0xeb   : > { %v880_v27 = vadd.f32 %v4188_v37, %v879_v25  ;;  %3740 = vmatprep.mubr.msk.f32.mxu1 %vm1594_vm3, %v1468_v21  ;;  %v1471_v31 = vmax.f32 %v885_v24, 0.0 }
  0xec   : > { %v3554_v28 = vpop.f32.mrf.mxu0  ;;  %3697 = vmatmul.mubr.msk.f32.gmra.mxu0 %vm364_vm1, %v339_v22  ;;  %3741 = vmatmul.mubr.msk.f32.gmra.mxu1 %vm1594_vm3, %v1469_v23  ;;  %v355_v23 = vld [vmem:[%s3984_s26 + $0x3f8] sm:$0xff] }
  0xed   : > { %v1470_v29 = vmax.f32 %v880_v27, 0.0  ;;  %3699 = vmatprep.mubr.msk.f32.mxu0 %vm364_vm1, %v340_v26  ;;  %v895_v32 = vadd.f32 %v3554_v28, %v4188_v37 }
  0xee   : > { %v889_v33 = vpop.f32.mrf.mxu0 }
  0xef   : > { %v890_v35 = vadd.f32 %v4188_v37, %v889_v33  ;;  %3743 = vmatprep.mubr.msk.f32.mxu1 %vm1594_vm3, %v1470_v29  ;;  %v1473_v40 = vmax.f32 %v895_v32, 0.0 }
  0xf0   : > { %v3557_v36 = vpop.f32.mrf.mxu0  ;;  %3700 = vmatmul.mubr.msk.f32.gmra.mxu0 %vm364_vm1, %v341_v30  ;;  %3744 = vmatmul.mubr.msk.f32.gmra.mxu1 %vm1594_vm3, %v1471_v31 }
  0xf1   : > { %v1472_v38 = vmax.f32 %v890_v35, 0.0  ;;  %3702 = vmatprep.mubr.msk.f32.mxu0 %vm364_vm1, %v342_v34  ;;  %v905_v41 = vadd.f32 %v3557_v36, %v4188_v37 }
  0xf2   : > { %v899_v42 = vpop.f32.mrf.mxu0 }
  0xf3   : > { %v900_v44 = vadd.f32 %v4188_v37, %v899_v42  ;;  %3746 = vmatprep.mubr.msk.f32.mxu1 %vm1594_vm3, %v1472_v38  ;;  %v1475_v48 = vmax.f32 %v905_v41, 0.0 }
  0xf4   : > { %v3560_v45 = vpop.f32.mrf.mxu0  ;;  %3703 = vmatmul.mubr.msk.f32.gmra.mxu0 %vm364_vm1, %v343_v39  ;;  %3747 = vmatmul.mubr.msk.f32.gmra.mxu1 %vm1594_vm3, %v1473_v40 }
  0xf5   : > { %v1474_v46 = vmax.f32 %v900_v44, 0.0  ;;  %3705 = vmatprep.mubr.msk.f32.mxu0 %vm364_vm1, %v344_v43  ;;  %v915_v49 = vadd.f32 %v3560_v45, %v4188_v37 }
  0xf6   : > { %v909_v50 = vpop.f32.mrf.mxu0 }
  0xf7   : > { %v910_v52 = vadd.f32 %v4188_v37, %v909_v50  ;;  %3749 = vmatprep.mubr.msk.f32.mxu1 %vm1594_vm3, %v1474_v46  ;;  %v1477_v56 = vmax.f32 %v915_v49, 0.0 }
  0xf8   : > { %v3563_v53 = vpop.f32.mrf.mxu0  ;;  %3706 = vmatmul.mubr.msk.f32.gmra.mxu0 %vm364_vm1, %v345_v47  ;;  %3750 = vmatmul.mubr.msk.f32.gmra.mxu1 %vm1594_vm3, %v1475_v48 }
  0xf9   : > { %v1476_v54 = vmax.f32 %v910_v52, 0.0  ;;  %3708 = vmatprep.mubr.msk.f32.mxu0 %vm364_vm1, %v346_v51  ;;  %v925_v57 = vadd.f32 %v3563_v53, %v4188_v37 }
  0xfa   : > { %v919_v58 = vpop.f32.mrf.mxu0 }
  0xfb   : > { %v920_v60 = vadd.f32 %v4188_v37, %v919_v58  ;;  %3752 = vmatprep.mubr.msk.f32.mxu1 %vm1594_vm3, %v1476_v54  ;;  %v1479_v0 = vmax.f32 %v925_v57, 0.0 }
  0xfc   : > { %v3566_v61 = vpop.f32.mrf.mxu0  ;;  %3709 = vmatmul.mubr.msk.f32.gmra.mxu0 %vm364_vm1, %v347_v55  ;;  %3753 = vmatmul.mubr.msk.f32.gmra.mxu1 %vm1594_vm3, %v1477_v56 }
  0xfd   : > { %v1478_v62 = vmax.f32 %v920_v60, 0.0  ;;  %3711 = vmatprep.mubr.msk.f32.mxu0 %vm364_vm1, %v348_v59  ;;  %v935_v1 = vadd.f32 %v3566_v61, %v4188_v37 }
  0xfe   : > { %v929_v2 = vpop.f32.mrf.mxu0 }
  0xff   : > { %v930_v4 = vadd.f32 %v4188_v37, %v929_v2  ;;  %3755 = vmatprep.mubr.msk.f32.mxu1 %vm1594_vm3, %v1478_v62  ;;  %v1481_v8 = vmax.f32 %v935_v1, 0.0 }
 0x100   : > { %v3569_v5 = vpop.f32.mrf.mxu0  ;;  %3712 = vmatmul.mubr.msk.f32.gmra.mxu0 %vm364_vm1, %v349_v63  ;;  %3756 = vmatmul.mubr.msk.f32.gmra.mxu1 %vm1594_vm3, %v1479_v0 }
 0x101   : > { %v1480_v6 = vmax.f32 %v930_v4, 0.0  ;;  %3714 = vmatprep.mubr.msk.f32.mxu0 %vm364_vm1, %v350_v3  ;;  %v945_v9 = vadd.f32 %v3569_v5, %v4188_v37 }
 0x102   : > { %v939_v10 = vpop.f32.mrf.mxu0 }
 0x103   : > { %v940_v12 = vadd.f32 %v4188_v37, %v939_v10  ;;  %3758 = vmatprep.mubr.msk.f32.mxu1 %vm1594_vm3, %v1480_v6  ;;  %v1483_v16 = vmax.f32 %v945_v9, 0.0 }
 0x104   : > { %v3572_v13 = vpop.f32.mrf.mxu0  ;;  %3715 = vmatmul.mubr.msk.f32.gmra.mxu0 %vm364_vm1, %v351_v7  ;;  %3759 = vmatmul.mubr.msk.f32.gmra.mxu1 %vm1594_vm3, %v1481_v8 }
 0x105   : > { %v1482_v14 = vmax.f32 %v940_v12, 0.0  ;;  %3717 = vmatprep.mubr.msk.f32.mxu0 %vm364_vm1, %v352_v11  ;;  %v955_v17 = vadd.f32 %v3572_v13, %v4188_v37 }
 0x106   : > { %v949_v18 = vpop.f32.mrf.mxu0 }
 0x107   : > { %v950_v20 = vadd.f32 %v4188_v37, %v949_v18  ;;  %3761 = vmatprep.mubr.msk.f32.mxu1 %vm1594_vm3, %v1482_v14  ;;  %v1485_v24 = vmax.f32 %v955_v17, 0.0 }
 0x108   : > { %v3575_v21 = vpop.f32.mrf.mxu0  ;;  %3718 = vmatmul.mubr.msk.f32.gmra.mxu0 %vm364_vm1, %v353_v15  ;;  %3762 = vmatmul.mubr.msk.f32.gmra.mxu1 %vm1594_vm3, %v1483_v16 }
 0x109   : > { %v1484_v22 = vmax.f32 %v950_v20, 0.0  ;;  %3720 = vmatprep.mubr.msk.f32.mxu0 %vm364_vm1, %v354_v19  ;;  %v965_v25 = vadd.f32 %v3575_v21, %v4188_v37 }
 0x10a   : > { %v959_v26 = vpop.f32.mrf.mxu0 }
 0x10b   : > { %v960_v27 = vadd.f32 %v4188_v37, %v959_v26  ;;  %3764 = vmatprep.mubr.msk.f32.mxu1 %vm1594_vm3, %v1484_v22  ;;  %v1487_v30 = vmax.f32 %v965_v25, 0.0 }
 0x10c   : > { %v3578_v28 = vpop.f32.mrf.mxu0  ;;  %3721 = vmatmul.mubr.msk.f32.gmra.mxu0 %vm364_vm1, %v355_v23  ;;  %3765 = vmatmul.mubr.msk.f32.gmra.mxu1 %vm1594_vm3, %v1485_v24 }
 0x10d   : > { %v1486_v29 = vmax.f32 %v960_v27, 0.0  ;;  %v975_v31 = vadd.f32 %v3578_v28, %v4188_v37 }
 0x10e   : > { %v969_v32 = vpop.f32.mrf.mxu0 }
 0x10f   : > { %v970_v33 = vadd.f32 %v4188_v37, %v969_v32  ;;  %3767 = vmatprep.mubr.msk.f32.mxu1 %vm1594_vm3, %v1486_v29  ;;  %v1489_v36 = vmax.f32 %v975_v31, 0.0 }
 0x110   : > { %v3581_v34 = vpop.f32.mrf.mxu0  ;;  %3768 = vmatmul.mubr.msk.f32.gmra.mxu1 %vm1594_vm3, %v1487_v30 }
 0x111   : > { %v1488_v35 = vmax.f32 %v970_v33, 0.0  ;;  %v985_v38 = vadd.f32 %v3581_v34, %v4188_v37 }
 0x112   : > { %v979_v39 = vpop.f32.mrf.mxu0 }
 0x113   : > { %v980_v40 = vadd.f32 %v4188_v37, %v979_v39  ;;  %3770 = vmatprep.mubr.msk.f32.mxu1 %vm1594_vm3, %v1488_v35  ;;  %v1491_v43 = vmax.f32 %v985_v38, 0.0 }
 0x114   : > { %v3584_v41 = vpop.f32.mrf.mxu0  ;;  %3771 = vmatmul.mubr.msk.f32.gmra.mxu1 %vm1594_vm3, %v1489_v36 }
 0x115   : > { %v1490_v42 = vmax.f32 %v980_v40, 0.0  ;;  %v995_v44 = vadd.f32 %v3584_v41, %v4188_v37 }
 0x116   : > { %v989_v45 = vpop.f32.mrf.mxu0 }
 0x117   : > { %v990_v46 = vadd.f32 %v4188_v37, %v989_v45  ;;  %3773 = vmatprep.mubr.msk.f32.mxu1 %vm1594_vm3, %v1490_v42  ;;  %v1493_v49 = vmax.f32 %v995_v44, 0.0 }
 0x118   : > { %v3587_v47 = vpop.f32.mrf.mxu0  ;;  %3774 = vmatmul.mubr.msk.f32.gmra.mxu1 %vm1594_vm3, %v1491_v43 }
 0x119   : > { %v1492_v48 = vmax.f32 %v990_v46, 0.0  ;;  %v1005_v50 = vadd.f32 %v3587_v47, %v4188_v37 }
 0x11a   : > { %v999_v51 = vpop.f32.mrf.mxu0 }
 0x11b   : > { %v1000_v52 = vadd.f32 %v4188_v37, %v999_v51  ;;  %3776 = vmatprep.mubr.msk.f32.mxu1 %vm1594_vm3, %v1492_v48  ;;  %v1495_v55 = vmax.f32 %v1005_v50, 0.0 }
 0x11c   : > { %v3590_v53 = vpop.f32.mrf.mxu0  ;;  %3777 = vmatmul.mubr.msk.f32.gmra.mxu1 %vm1594_vm3, %v1493_v49 }
 0x11d   : > { %v1494_v54 = vmax.f32 %v1000_v52, 0.0  ;;  %v1015_v56 = vadd.f32 %v3590_v53, %v4188_v37 }
 0x11e   : > { %v1009_v57 = vpop.f32.mrf.mxu0 }
 0x11f   : > { %v1010_v58 = vadd.f32 %v4188_v37, %v1009_v57  ;;  %3779 = vmatprep.mubr.msk.f32.mxu1 %vm1594_vm3, %v1494_v54  ;;  %v1497_v61 = vmax.f32 %v1015_v56, 0.0 }
 0x120   : > { %v3593_v59 = vpop.f32.mrf.mxu0  ;;  %3780 = vmatmul.mubr.msk.f32.gmra.mxu1 %vm1594_vm3, %v1495_v55 }
 0x121   : > { %v1496_v60 = vmax.f32 %v1010_v58, 0.0  ;;  %v1025_v62 = vadd.f32 %v3593_v59, %v4188_v37 }
 0x122   : > { %v1019_v63 = vpop.f32.mrf.mxu0 }
 0x123   : > { %v1020_v0 = vadd.f32 %v4188_v37, %v1019_v63  ;;  %3782 = vmatprep.mubr.msk.f32.mxu1 %vm1594_vm3, %v1496_v60  ;;  %v1499_v3 = vmax.f32 %v1025_v62, 0.0 }
 0x124   : > { %v3596_v1 = vpop.f32.mrf.mxu0  ;;  %3783 = vmatmul.mubr.msk.f32.gmra.mxu1 %vm1594_vm3, %v1497_v61 }
 0x125   : > { %v1498_v2 = vmax.f32 %v1020_v0, 0.0  ;;  %v1035_v4 = vadd.f32 %v3596_v1, %v4188_v37 }
 0x126   : > { %v1029_v5 = vpop.f32.mrf.mxu0 }
 0x127   : > { %v1030_v6 = vadd.f32 %v4188_v37, %v1029_v5  ;;  %3785 = vmatprep.mubr.msk.f32.mxu1 %vm1594_vm3, %v1498_v2  ;;  %v1501_v9 = vmax.f32 %v1035_v4, 0.0 }
 0x128   : > { %v3599_v7 = vpop.f32.mrf.mxu0  ;;  %3786 = vmatmul.mubr.msk.f32.gmra.mxu1 %vm1594_vm3, %v1499_v3 }
 0x129   : > { %v1500_v8 = vmax.f32 %v1030_v6, 0.0  ;;  %v1045_v10 = vadd.f32 %v3599_v7, %v4188_v37 }
 0x12a   : > { %v1039_v11 = vpop.f32.mrf.mxu0 }
 0x12b   : > { %v1040_v12 = vadd.f32 %v4188_v37, %v1039_v11  ;;  %3788 = vmatprep.mubr.msk.f32.mxu1 %vm1594_vm3, %v1500_v8  ;;  %v1503_v15 = vmax.f32 %v1045_v10, 0.0 }
 0x12c   : > { %v3602_v13 = vpop.f32.mrf.mxu0  ;;  %3789 = vmatmul.mubr.msk.f32.gmra.mxu1 %vm1594_vm3, %v1501_v9 }
 0x12d   : > { %v1502_v14 = vmax.f32 %v1040_v12, 0.0  ;;  %v1055_v16 = vadd.f32 %v3602_v13, %v4188_v37 }
 0x12e   : > { %v1049_v17 = vpop.f32.mrf.mxu0 }
 0x12f   : > { %v1050_v18 = vadd.f32 %v4188_v37, %v1049_v17  ;;  %3791 = vmatprep.mubr.msk.f32.mxu1 %vm1594_vm3, %v1502_v14  ;;  %v1505_v21 = vmax.f32 %v1055_v16, 0.0 }
 0x130   : > { %v3605_v19 = vpop.f32.mrf.mxu0  ;;  %3792 = vmatmul.mubr.msk.f32.gmra.mxu1 %vm1594_vm3, %v1503_v15 }
 0x131   : > { %v1504_v20 = vmax.f32 %v1050_v18, 0.0  ;;  %v1065_v22 = vadd.f32 %v3605_v19, %v4188_v37 }
 0x132   : > { %v1059_v23 = vpop.f32.mrf.mxu0 }
 0x133   : > { %v1060_v24 = vadd.f32 %v4188_v37, %v1059_v23  ;;  %3794 = vmatprep.mubr.msk.f32.mxu1 %vm1594_vm3, %v1504_v20  ;;  %v1507_v27 = vmax.f32 %v1065_v22, 0.0 }
 0x134   : > { %v3608_v25 = vpop.f32.mrf.mxu0  ;;  %3795 = vmatmul.mubr.msk.f32.gmra.mxu1 %vm1594_vm3, %v1505_v21 }
 0x135   : > { %v1506_v26 = vmax.f32 %v1060_v24, 0.0  ;;  %v1075_v28 = vadd.f32 %v3608_v25, %v4188_v37 }
 0x136   : > { %v1069_v29 = vpop.f32.mrf.mxu0 }
 0x137   : > { %v1070_v30 = vadd.f32 %v4188_v37, %v1069_v29  ;;  %3797 = vmatprep.mubr.msk.f32.mxu1 %vm1594_vm3, %v1506_v26  ;;  %v1509_v33 = vmax.f32 %v1075_v28, 0.0 }
 0x138   : > { %v3611_v31 = vpop.f32.mrf.mxu0  ;;  %3798 = vmatmul.mubr.msk.f32.gmra.mxu1 %vm1594_vm3, %v1507_v27 }
 0x139   : > { %v1508_v32 = vmax.f32 %v1070_v30, 0.0  ;;  %v1085_v34 = vadd.f32 %v3611_v31, %v4188_v37 }
 0x13a   : > { %v1079_v35 = vpop.f32.mrf.mxu0 }
 0x13b   : > { %v1080_v36 = vadd.f32 %v4188_v37, %v1079_v35  ;;  %3800 = vmatprep.mubr.msk.f32.mxu1 %vm1594_vm3, %v1508_v32  ;;  %v1511_v40 = vmax.f32 %v1085_v34, 0.0 }
 0x13c   : > { %v3614_v38 = vpop.f32.mrf.mxu0  ;;  %3801 = vmatmul.mubr.msk.f32.gmra.mxu1 %vm1594_vm3, %v1509_v33 }
 0x13d   : > { %v1510_v39 = vmax.f32 %v1080_v36, 0.0  ;;  %v1095_v41 = vadd.f32 %v3614_v38, %v4188_v37 }
 0x13e   : > { %v1089_v42 = vpop.f32.mrf.mxu0 }
 0x13f   : > { %v1090_v43 = vadd.f32 %v4188_v37, %v1089_v42  ;;  %3803 = vmatprep.mubr.msk.f32.mxu1 %vm1594_vm3, %v1510_v39  ;;  %v1513_v46 = vmax.f32 %v1095_v41, 0.0 }
 0x140   : > { %v3617_v44 = vpop.f32.mrf.mxu0  ;;  %3804 = vmatmul.mubr.msk.f32.gmra.mxu1 %vm1594_vm3, %v1511_v40 }
 0x141   : > { %v1512_v45 = vmax.f32 %v1090_v43, 0.0  ;;  %v1105_v47 = vadd.f32 %v3617_v44, %v4188_v37 }
 0x142   : > { %v1099_v48 = vpop.f32.mrf.mxu0 }
 0x143   : > { %v1100_v49 = vadd.f32 %v4188_v37, %v1099_v48  ;;  %3806 = vmatprep.mubr.msk.f32.mxu1 %vm1594_vm3, %v1512_v45  ;;  %v1515_v52 = vmax.f32 %v1105_v47, 0.0 }
 0x144   : > { %v3620_v50 = vpop.f32.mrf.mxu0  ;;  %3807 = vmatmul.mubr.msk.f32.gmra.mxu1 %vm1594_vm3, %v1513_v46 }
 0x145   : > { %v1514_v51 = vmax.f32 %v1100_v49, 0.0  ;;  %v1115_v53 = vadd.f32 %v3620_v50, %v4188_v37 }
 0x146   : > { %v1109_v54 = vpop.f32.mrf.mxu0 }
 0x147   : > { %v1110_v55 = vadd.f32 %v4188_v37, %v1109_v54  ;;  %3809 = vmatprep.mubr.msk.f32.mxu1 %vm1594_vm3, %v1514_v51  ;;  %v1517_v58 = vmax.f32 %v1115_v53, 0.0 }
 0x148   : > { %v3623_v56 = vpop.f32.mrf.mxu0  ;;  %3810 = vmatmul.mubr.msk.f32.gmra.mxu1 %vm1594_vm3, %v1515_v52 }
 0x149   : > { %v1516_v57 = vmax.f32 %v1110_v55, 0.0  ;;  %v1125_v59 = vadd.f32 %v3623_v56, %v4188_v37 }
 0x14a   : > { %v1119_v60 = vpop.f32.mrf.mxu0 }
 0x14b   : > { %v1120_v61 = vadd.f32 %v4188_v37, %v1119_v60  ;;  %3812 = vmatprep.mubr.msk.f32.mxu1 %vm1594_vm3, %v1516_v57  ;;  %v1519_v0 = vmax.f32 %v1125_v59, 0.0 }
 0x14c   : > { %v3626_v62 = vpop.f32.mrf.mxu0  ;;  %3813 = vmatmul.mubr.msk.f32.gmra.mxu1 %vm1594_vm3, %v1517_v58 }
 0x14d   : > { %v1518_v63 = vmax.f32 %v1120_v61, 0.0  ;;  %v1135_v1 = vadd.f32 %v3626_v62, %v4188_v37 }
 0x14e   : > { %v1129_v2 = vpop.f32.mrf.mxu0 }
 0x14f   : > { %v1130_v3 = vadd.f32 %v4188_v37, %v1129_v2  ;;  %3815 = vmatprep.mubr.msk.f32.mxu1 %vm1594_vm3, %v1518_v63  ;;  %v1521_v6 = vmax.f32 %v1135_v1, 0.0 }
 0x150   : > { %v3629_v4 = vpop.f32.mrf.mxu0  ;;  %3816 = vmatmul.mubr.msk.f32.gmra.mxu1 %vm1594_vm3, %v1519_v0 }
 0x151   : > { %v1520_v5 = vmax.f32 %v1130_v3, 0.0  ;;  %v1145_v7 = vadd.f32 %v3629_v4, %v4188_v37 }
 0x152   : > { %v1139_v8 = vpop.f32.mrf.mxu0 }
 0x153   : > { %v1140_v9 = vadd.f32 %v4188_v37, %v1139_v8  ;;  %3818 = vmatprep.mubr.msk.f32.mxu1 %vm1594_vm3, %v1520_v5  ;;  %v1523_v12 = vmax.f32 %v1145_v7, 0.0 }
 0x154   : > { %v3632_v10 = vpop.f32.mrf.mxu0  ;;  %3819 = vmatmul.mubr.msk.f32.gmra.mxu1 %vm1594_vm3, %v1521_v6 }
 0x155   : > { %v1522_v11 = vmax.f32 %v1140_v9, 0.0  ;;  %v1155_v13 = vadd.f32 %v3632_v10, %v4188_v37 }
 0x156   : > { %v1149_v14 = vpop.f32.mrf.mxu0 }
 0x157   : > { %v1150_v15 = vadd.f32 %v4188_v37, %v1149_v14  ;;  %3821 = vmatprep.mubr.msk.f32.mxu1 %vm1594_vm3, %v1522_v11  ;;  %v1525_v18 = vmax.f32 %v1155_v13, 0.0 }
 0x158   : > { %v3635_v16 = vpop.f32.mrf.mxu0  ;;  %3822 = vmatmul.mubr.msk.f32.gmra.mxu1 %vm1594_vm3, %v1523_v12 }
 0x159   : > { %v1524_v17 = vmax.f32 %v1150_v15, 0.0  ;;  %v1165_v19 = vadd.f32 %v3635_v16, %v4188_v37 }
 0x15a   : > { %v1159_v20 = vpop.f32.mrf.mxu0 }
 0x15b   : > { %v1160_v21 = vadd.f32 %v4188_v37, %v1159_v20  ;;  %3824 = vmatprep.mubr.msk.f32.mxu1 %vm1594_vm3, %v1524_v17  ;;  %v1527_v24 = vmax.f32 %v1165_v19, 0.0 }
 0x15c   : > { %v3638_v22 = vpop.f32.mrf.mxu0  ;;  %3825 = vmatmul.mubr.msk.f32.gmra.mxu1 %vm1594_vm3, %v1525_v18 }
 0x15d   : > { %v1526_v23 = vmax.f32 %v1160_v21, 0.0  ;;  %v1175_v25 = vadd.f32 %v3638_v22, %v4188_v37 }
 0x15e   : > { %v1169_v26 = vpop.f32.mrf.mxu0 }
 0x15f   : > { %v1170_v27 = vadd.f32 %v4188_v37, %v1169_v26  ;;  %3827 = vmatprep.mubr.msk.f32.mxu1 %vm1594_vm3, %v1526_v23  ;;  %v1529_v30 = vmax.f32 %v1175_v25, 0.0 }
 0x160   : > { %v3641_v28 = vpop.f32.mrf.mxu0  ;;  %3828 = vmatmul.mubr.msk.f32.gmra.mxu1 %vm1594_vm3, %v1527_v24 }
 0x161   : > { %v1528_v29 = vmax.f32 %v1170_v27, 0.0  ;;  %v1185_v31 = vadd.f32 %v3641_v28, %v4188_v37 }
 0x162   : > { %v1179_v32 = vpop.f32.mrf.mxu0 }
 0x163   : > { %v1180_v33 = vadd.f32 %v4188_v37, %v1179_v32  ;;  %3830 = vmatprep.mubr.msk.f32.mxu1 %vm1594_vm3, %v1528_v29  ;;  %v1531_v36 = vmax.f32 %v1185_v31, 0.0 }
 0x164   : > { %v3644_v34 = vpop.f32.mrf.mxu0  ;;  %3831 = vmatmul.mubr.msk.f32.gmra.mxu1 %vm1594_vm3, %v1529_v30 }
 0x165   : > { %v1530_v35 = vmax.f32 %v1180_v33, 0.0  ;;  %v1195_v38 = vadd.f32 %v3644_v34, %v4188_v37 }
 0x166   : > { %v1189_v39 = vpop.f32.mrf.mxu0 }
 0x167   : > { %v1190_v40 = vadd.f32 %v4188_v37, %v1189_v39  ;;  %3833 = vmatprep.mubr.msk.f32.mxu1 %vm1594_vm3, %v1530_v35  ;;  %v1533_v43 = vmax.f32 %v1195_v38, 0.0 }
 0x168   : > { %v3647_v41 = vpop.f32.mrf.mxu0  ;;  %3834 = vmatmul.mubr.msk.f32.gmra.mxu1 %vm1594_vm3, %v1531_v36 }
 0x169   : > { %v1532_v42 = vmax.f32 %v1190_v40, 0.0  ;;  %v1205_v44 = vadd.f32 %v3647_v41, %v4188_v37 }
 0x16a   : > { %v1199_v45 = vpop.f32.mrf.mxu0 }
 0x16b   : > { %v1200_v46 = vadd.f32 %v4188_v37, %v1199_v45  ;;  %3836 = vmatprep.mubr.msk.f32.mxu1 %vm1594_vm3, %v1532_v42  ;;  %v1535_v49 = vmax.f32 %v1205_v44, 0.0 }
 0x16c   : > { %v3650_v47 = vpop.f32.mrf.mxu0  ;;  %3837 = vmatmul.mubr.msk.f32.gmra.mxu1 %vm1594_vm3, %v1533_v43 }
 0x16d   : > { %v1534_v48 = vmax.f32 %v1200_v46, 0.0  ;;  %v1215_v50 = vadd.f32 %v3650_v47, %v4188_v37 }
 0x16e   : > { %v1209_v51 = vpop.f32.mrf.mxu0 }
 0x16f   : > { %v1210_v52 = vadd.f32 %v4188_v37, %v1209_v51  ;;  %3839 = vmatprep.mubr.msk.f32.mxu1 %vm1594_vm3, %v1534_v48  ;;  %v1537_v55 = vmax.f32 %v1215_v50, 0.0 }
 0x170   : > { %v3653_v53 = vpop.f32.mrf.mxu0  ;;  %3840 = vmatmul.mubr.msk.f32.gmra.mxu1 %vm1594_vm3, %v1535_v49  ;;  %v4448_v49 = vld [vmem:[%s4919_s4] ss:$0 sm:$0xff] }
 0x171   : > { %v1536_v54 = vmax.f32 %v1210_v52, 0.0  ;;  %v1225_v56 = vadd.f32 %v3653_v53, %v4188_v37 }
 0x172   : > { %v1219_v57 = vpop.f32.mrf.mxu0 }
 0x173   : > { %v1220_v58 = vadd.f32 %v4188_v37, %v1219_v57  ;;  %3842 = vmatprep.mubr.msk.f32.mxu1 %vm1594_vm3, %v1536_v54  ;;  %v1539_v61 = vmax.f32 %v1225_v56, 0.0 }
 0x174   : > { %v3656_v59 = vpop.f32.mrf.mxu0  ;;  %3843 = vmatmul.mubr.msk.f32.gmra.mxu1 %vm1594_vm3, %v1537_v55 }
 0x175   : > { %v1538_v60 = vmax.f32 %v1220_v58, 0.0  ;;  %v1235_v62 = vadd.f32 %v3656_v59, %v4188_v37 }
 0x176   : > { %v1229_v63 = vpop.f32.mrf.mxu0 }
 0x177   : > { %v1230_v0 = vadd.f32 %v4188_v37, %v1229_v63  ;;  %3845 = vmatprep.mubr.msk.f32.mxu1 %vm1594_vm3, %v1538_v60  ;;  %v1541_v3 = vmax.f32 %v1235_v62, 0.0 }
 0x178   : > { %v3659_v1 = vpop.f32.mrf.mxu0  ;;  %3846 = vmatmul.mubr.msk.f32.gmra.mxu1 %vm1594_vm3, %v1539_v61 }
 0x179   : > { %v1540_v2 = vmax.f32 %v1230_v0, 0.0  ;;  %v1245_v4 = vadd.f32 %v3659_v1, %v4188_v37 }
 0x17a   : > { %v1239_v5 = vpop.f32.mrf.mxu0 }
 0x17b   : > { %v1240_v6 = vadd.f32 %v4188_v37, %v1239_v5  ;;  %3848 = vmatprep.mubr.msk.f32.mxu1 %vm1594_vm3, %v1540_v2  ;;  %v1543_v9 = vmax.f32 %v1245_v4, 0.0 }
 0x17c   : > { %v3662_v7 = vpop.f32.mrf.mxu0  ;;  %3849 = vmatmul.mubr.msk.f32.gmra.mxu1 %vm1594_vm3, %v1541_v3 }
 0x17d   : > { %v1542_v8 = vmax.f32 %v1240_v6, 0.0  ;;  %v1255_v10 = vadd.f32 %v3662_v7, %v4188_v37 }
 0x17e   : > { %v1249_v11 = vpop.f32.mrf.mxu0 }
 0x17f   : > { %v1250_v12 = vadd.f32 %v4188_v37, %v1249_v11  ;;  %3851 = vmatprep.mubr.msk.f32.mxu1 %vm1594_vm3, %v1542_v8  ;;  %v1545_v15 = vmax.f32 %v1255_v10, 0.0 }
 0x180   : > { %v3665_v13 = vpop.f32.mrf.mxu0  ;;  %3852 = vmatmul.mubr.msk.f32.gmra.mxu1 %vm1594_vm3, %v1543_v9 }
 0x181   : > { %v1544_v14 = vmax.f32 %v1250_v12, 0.0  ;;  %v1265_v16 = vadd.f32 %v3665_v13, %v4188_v37 }
 0x182   : > { %v1259_v17 = vpop.f32.mrf.mxu0 }
 0x183   : > { %v1260_v18 = vadd.f32 %v4188_v37, %v1259_v17  ;;  %3854 = vmatprep.mubr.msk.f32.mxu1 %vm1594_vm3, %v1544_v14  ;;  %v1547_v21 = vmax.f32 %v1265_v16, 0.0 }
 0x184   : > { %v3668_v19 = vpop.f32.mrf.mxu0  ;;  %3855 = vmatmul.mubr.msk.f32.gmra.mxu1 %vm1594_vm3, %v1545_v15 }
 0x185   : > { %v1546_v20 = vmax.f32 %v1260_v18, 0.0  ;;  %v1275_v22 = vadd.f32 %v3668_v19, %v4188_v37 }
 0x186   : > { %v1269_v23 = vpop.f32.mrf.mxu0 }
 0x187   : > { %v1270_v24 = vadd.f32 %v4188_v37, %v1269_v23  ;;  %3857 = vmatprep.mubr.msk.f32.mxu1 %vm1594_vm3, %v1546_v20  ;;  %v1549_v27 = vmax.f32 %v1275_v22, 0.0 }
 0x188   : > { %v3671_v25 = vpop.f32.mrf.mxu0  ;;  %3858 = vmatmul.mubr.msk.f32.gmra.mxu1 %vm1594_vm3, %v1547_v21 }
 0x189   : > { %v1548_v26 = vmax.f32 %v1270_v24, 0.0  ;;  %v1285_v28 = vadd.f32 %v3671_v25, %v4188_v37 }
 0x18a   : > { %v1279_v29 = vpop.f32.mrf.mxu0 }
 0x18b   : > { %v1280_v30 = vadd.f32 %v4188_v37, %v1279_v29  ;;  %3860 = vmatprep.mubr.msk.f32.mxu1 %vm1594_vm3, %v1548_v26  ;;  %v1551_v33 = vmax.f32 %v1285_v28, 0.0 }
 0x18c   : > { %v3674_v31 = vpop.f32.mrf.mxu0  ;;  %3861 = vmatmul.mubr.msk.f32.gmra.mxu1 %vm1594_vm3, %v1549_v27 }
 0x18d   : > { %v1550_v32 = vmax.f32 %v1280_v30, 0.0  ;;  %v1295_v34 = vadd.f32 %v3674_v31, %v4188_v37 }
 0x18e   : > { %v1289_v35 = vpop.f32.mrf.mxu0 }
 0x18f   : > { %v1290_v36 = vadd.f32 %v4188_v37, %v1289_v35  ;;  %3863 = vmatprep.mubr.msk.f32.mxu1 %vm1594_vm3, %v1550_v32  ;;  %v1553_v40 = vmax.f32 %v1295_v34, 0.0 }
 0x190   : > { %v3677_v38 = vpop.f32.mrf.mxu0  ;;  %3864 = vmatmul.mubr.msk.f32.gmra.mxu1 %vm1594_vm3, %v1551_v33 }
 0x191   : > { %v1552_v39 = vmax.f32 %v1290_v36, 0.0  ;;  %v1305_v41 = vadd.f32 %v3677_v38, %v4188_v37 }
 0x192   : > { %v1299_v42 = vpop.f32.mrf.mxu0 }
 0x193   : > { %v1300_v43 = vadd.f32 %v4188_v37, %v1299_v42  ;;  %3866 = vmatprep.mubr.msk.f32.mxu1 %vm1594_vm3, %v1552_v39  ;;  %v1555_v46 = vmax.f32 %v1305_v41, 0.0 }
 0x194   : > { %v3680_v44 = vpop.f32.mrf.mxu0  ;;  %3867 = vmatmul.mubr.msk.f32.gmra.mxu1 %vm1594_vm3, %v1553_v40 }
 0x195   : > { %v1554_v45 = vmax.f32 %v1300_v43, 0.0  ;;  %v1315_v47 = vadd.f32 %v3680_v44, %v4188_v37 }
 0x196   : > { %v1309_v48 = vpop.f32.mrf.mxu0 }
 0x197   : > { %v1310_v50 = vadd.f32 %v4188_v37, %v1309_v48  ;;  %3869 = vmatprep.mubr.msk.f32.mxu1 %vm1594_vm3, %v1554_v45  ;;  %v1557_v55 = vmax.f32 %v1315_v47, 0.0 }
 0x198   : > { %v3683_v51 = vpop.f32.mrf.mxu0  ;;  %v3727_v52 = vpop.f32.mrf.mxu1  ;;  %3870 = vmatmul.mubr.msk.f32.gmra.mxu1 %vm1594_vm3, %v1555_v46 }
 0x199   : > { %v1556_v53 = vmax.f32 %v1310_v50, 0.0  ;;  %v2055_v54 = vadd.f32 %v3727_v52, %v4448_v49  ;;  %v1325_v56 = vadd.f32 %v3683_v51, %v4188_v37 }
 0x19a   : > { %v1319_v57 = vpop.f32.mrf.mxu0  ;;  %v2049_v58 = vpop.f32.mrf.mxu1 }
 0x19b   : > { %v2689_v59 = vmax.f32 %v2055_v54, 0.0  ;;  %v1320_v60 = vadd.f32 %v4188_v37, %v1319_v57  ;;  %v2050_v61 = vadd.f32 %v4448_v49, %v2049_v58  ;;  %3872 = vmatprep.mubr.msk.f32.mxu1 %vm1594_vm3, %v1556_v53  ;;  %v1559_v3 = vmax.f32 %v1325_v56, 0.0 }
 0x19c   : > { %v3686_v62 = vpop.f32.mrf.mxu0  ;;  %v3730_v63 = vpop.f32.mrf.mxu1  ;;  %3873 = vmatmul.mubr.msk.f32.gmra.mxu1 %vm1594_vm3, %v1557_v55 }
 0x19d   : > { %2817 = vst.msk [vmem:[%s4459_s10 + $0x8] sm:$0xff] %vm364_vm1, %v2689_v59  ;;  %v1558_v0 = vmax.f32 %v1320_v60, 0.0  ;;  %v2688_v1 = vmax.f32 %v2050_v61, 0.0  ;;  %v2065_v2 = vadd.f32 %v3730_v63, %v4448_v49  ;;  %v1335_v4 = vadd.f32 %v3686_v62, %v4188_v37 }
 0x19e   : > { %v1329_v5 = vpop.f32.mrf.mxu0  ;;  %v2059_v6 = vpop.f32.mrf.mxu1 }
 0x19f   : > { %2816 = vst.msk [vmem:[%s4459_s10] sm:$0xff] %vm364_vm1, %v2688_v1  ;;  %v2691_v7 = vmax.f32 %v2065_v2, 0.0  ;;  %v1330_v8 = vadd.f32 %v4188_v37, %v1329_v5  ;;  %v2060_v9 = vadd.f32 %v4448_v49, %v2059_v6  ;;  %3875 = vmatprep.mubr.msk.f32.mxu1 %vm1594_vm3, %v1558_v0  ;;  %v1561_v15 = vmax.f32 %v1335_v4, 0.0 }
 0x1a0   : > { %v3689_v10 = vpop.f32.mrf.mxu0  ;;  %v3733_v11 = vpop.f32.mrf.mxu1  ;;  %3876 = vmatmul.mubr.msk.f32.gmra.mxu1 %vm1594_vm3, %v1559_v3 }
 0x1a1   : > { %2819 = vst.msk [vmem:[%s4459_s10 + $0x18] sm:$0xff] %vm364_vm1, %v2691_v7  ;;  %v1560_v12 = vmax.f32 %v1330_v8, 0.0  ;;  %v2690_v13 = vmax.f32 %v2060_v9, 0.0  ;;  %v2075_v14 = vadd.f32 %v3733_v11, %v4448_v49  ;;  %v1345_v16 = vadd.f32 %v3689_v10, %v4188_v37 }
 0x1a2   : > { %v1339_v17 = vpop.f32.mrf.mxu0  ;;  %v2069_v18 = vpop.f32.mrf.mxu1 }
 0x1a3   : > { %2818 = vst.msk [vmem:[%s4459_s10 + $0x10] sm:$0xff] %vm364_vm1, %v2690_v13  ;;  %v2693_v19 = vmax.f32 %v2075_v14, 0.0  ;;  %v1340_v20 = vadd.f32 %v4188_v37, %v1339_v17  ;;  %v2070_v21 = vadd.f32 %v4448_v49, %v2069_v18  ;;  %3878 = vmatprep.mubr.msk.f32.mxu1 %vm1594_vm3, %v1560_v12  ;;  %v1563_v27 = vmax.f32 %v1345_v16, 0.0  ;;  %v4492_v37 = vld [vmem:[%s4917_s2] ss:$0 sm:$0xff] }
 0x1a4   : > { %v3692_v22 = vpop.f32.mrf.mxu0  ;;  %v3736_v23 = vpop.f32.mrf.mxu1  ;;  %3879 = vmatmul.mubr.msk.f32.gmra.mxu1 %vm1594_vm3, %v1561_v15 }
 0x1a5   : > { %2821 = vst.msk [vmem:[%s4459_s10 + $0x28] sm:$0xff] %vm364_vm1, %v2693_v19  ;;  %v1562_v24 = vmax.f32 %v1340_v20, 0.0  ;;  %v2692_v25 = vmax.f32 %v2070_v21, 0.0  ;;  %v2085_v26 = vadd.f32 %v3736_v23, %v4448_v49  ;;  %v1355_v28 = vadd.f32 %v4492_v37, %v3692_v22 }
 0x1a6   : > { %v1349_v29 = vpop.f32.mrf.mxu0  ;;  %v2079_v30 = vpop.f32.mrf.mxu1 }
 0x1a7   : > { %2820 = vst.msk [vmem:[%s4459_s10 + $0x20] sm:$0xff] %vm364_vm1, %v2692_v25  ;;  %v2695_v31 = vmax.f32 %v2085_v26, 0.0  ;;  %v1350_v32 = vadd.f32 %v4492_v37, %v1349_v29  ;;  %v2080_v33 = vadd.f32 %v4448_v49, %v2079_v30  ;;  %3881 = vmatprep.mubr.msk.f32.mxu1 %vm1594_vm3, %v1562_v24  ;;  %v1565_v40 = vmax.f32 %v1355_v28, 0.0 }
 0x1a8   : > { %v3695_v34 = vpop.f32.mrf.mxu0  ;;  %v3739_v35 = vpop.f32.mrf.mxu1  ;;  %3882 = vmatmul.mubr.msk.f32.gmra.mxu1 %vm1594_vm3, %v1563_v27 }
 0x1a9   : > { %2823 = vst.msk [vmem:[%s4459_s10 + $0x38] sm:$0xff] %vm364_vm1, %v2695_v31  ;;  %v1564_v36 = vmax.f32 %v1350_v32, 0.0  ;;  %v2694_v38 = vmax.f32 %v2080_v33, 0.0  ;;  %v2095_v39 = vadd.f32 %v3739_v35, %v4448_v49  ;;  %v1365_v41 = vadd.f32 %v4492_v37, %v3695_v34 }
 0x1aa   : > { %v1359_v42 = vpop.f32.mrf.mxu0  ;;  %v2089_v43 = vpop.f32.mrf.mxu1 }
 0x1ab   : > { %2822 = vst.msk [vmem:[%s4459_s10 + $0x30] sm:$0xff] %vm364_vm1, %v2694_v38  ;;  %v2697_v44 = vmax.f32 %v2095_v39, 0.0  ;;  %v1360_v45 = vadd.f32 %v4492_v37, %v1359_v42  ;;  %v2090_v46 = vadd.f32 %v4448_v49, %v2089_v43  ;;  %3884 = vmatprep.mubr.msk.f32.mxu1 %vm1594_vm3, %v1564_v36  ;;  %v1567_v53 = vmax.f32 %v1365_v41, 0.0 }
 0x1ac   : > { %v3698_v47 = vpop.f32.mrf.mxu0  ;;  %v3742_v48 = vpop.f32.mrf.mxu1  ;;  %3885 = vmatmul.mubr.msk.f32.gmra.mxu1 %vm1594_vm3, %v1565_v40 }
 0x1ad   : > { %2825 = vst.msk [vmem:[%s4459_s10 + $0x48] sm:$0xff] %vm364_vm1, %v2697_v44  ;;  %v1566_v50 = vmax.f32 %v1360_v45, 0.0  ;;  %v2696_v51 = vmax.f32 %v2090_v46, 0.0  ;;  %v2105_v52 = vadd.f32 %v3742_v48, %v4448_v49  ;;  %v1375_v54 = vadd.f32 %v4492_v37, %v3698_v47 }
 0x1ae   : > { %v1369_v55 = vpop.f32.mrf.mxu0  ;;  %v2099_v56 = vpop.f32.mrf.mxu1 }
 0x1af   : > { %2824 = vst.msk [vmem:[%s4459_s10 + $0x40] sm:$0xff] %vm364_vm1, %v2696_v51  ;;  %v2699_v57 = vmax.f32 %v2105_v52, 0.0  ;;  %v1370_v58 = vadd.f32 %v4492_v37, %v1369_v55  ;;  %v2100_v59 = vadd.f32 %v4448_v49, %v2099_v56  ;;  %3887 = vmatprep.mubr.msk.f32.mxu1 %vm1594_vm3, %v1566_v50  ;;  %v1569_v1 = vmax.f32 %v1375_v54, 0.0 }
 0x1b0   : > { %v3701_v60 = vpop.f32.mrf.mxu0  ;;  %v3745_v61 = vpop.f32.mrf.mxu1  ;;  %3888 = vmatmul.mubr.msk.f32.gmra.mxu1 %vm1594_vm3, %v1567_v53 }
 0x1b1   : > { %2827 = vst.msk [vmem:[%s4459_s10 + $0x58] sm:$0xff] %vm364_vm1, %v2699_v57  ;;  %v1568_v62 = vmax.f32 %v1370_v58, 0.0  ;;  %v2698_v63 = vmax.f32 %v2100_v59, 0.0  ;;  %v2115_v0 = vadd.f32 %v3745_v61, %v4448_v49  ;;  %v1385_v2 = vadd.f32 %v4492_v37, %v3701_v60 }
 0x1b2   : > { %v1379_v3 = vpop.f32.mrf.mxu0  ;;  %v2109_v4 = vpop.f32.mrf.mxu1 }
 0x1b3   : > { %2826 = vst.msk [vmem:[%s4459_s10 + $0x50] sm:$0xff] %vm364_vm1, %v2698_v63  ;;  %v2701_v5 = vmax.f32 %v2115_v0, 0.0  ;;  %v1380_v6 = vadd.f32 %v4492_v37, %v1379_v3  ;;  %v2110_v7 = vadd.f32 %v4448_v49, %v2109_v4  ;;  %3890 = vmatprep.mubr.msk.f32.mxu1 %vm1594_vm3, %v1568_v62  ;;  %v1571_v13 = vmax.f32 %v1385_v2, 0.0 }
 0x1b4   : > { %v3704_v8 = vpop.f32.mrf.mxu0  ;;  %v3748_v9 = vpop.f32.mrf.mxu1  ;;  %3891 = vmatmul.mubr.msk.f32.gmra.mxu1 %vm1594_vm3, %v1569_v1 }
 0x1b5   : > { %2829 = vst.msk [vmem:[%s4459_s10 + $0x68] sm:$0xff] %vm364_vm1, %v2701_v5  ;;  %v1570_v10 = vmax.f32 %v1380_v6, 0.0  ;;  %v2700_v11 = vmax.f32 %v2110_v7, 0.0  ;;  %v2125_v12 = vadd.f32 %v3748_v9, %v4448_v49  ;;  %v1395_v14 = vadd.f32 %v4492_v37, %v3704_v8 }
 0x1b6   : > { %v1389_v15 = vpop.f32.mrf.mxu0  ;;  %v2119_v16 = vpop.f32.mrf.mxu1 }
 0x1b7   : > { %2828 = vst.msk [vmem:[%s4459_s10 + $0x60] sm:$0xff] %vm364_vm1, %v2700_v11  ;;  %v2703_v17 = vmax.f32 %v2125_v12, 0.0  ;;  %v1390_v18 = vadd.f32 %v4492_v37, %v1389_v15  ;;  %v2120_v19 = vadd.f32 %v4448_v49, %v2119_v16  ;;  %3893 = vmatprep.mubr.msk.f32.mxu1 %vm1594_vm3, %v1570_v10  ;;  %v1573_v25 = vmax.f32 %v1395_v14, 0.0 }
 0x1b8   : > { %v3707_v20 = vpop.f32.mrf.mxu0  ;;  %v3751_v21 = vpop.f32.mrf.mxu1  ;;  %3894 = vmatmul.mubr.msk.f32.gmra.mxu1 %vm1594_vm3, %v1571_v13 }
 0x1b9   : > { %2831 = vst.msk [vmem:[%s4459_s10 + $0x78] sm:$0xff] %vm364_vm1, %v2703_v17  ;;  %v1572_v22 = vmax.f32 %v1390_v18, 0.0  ;;  %v2702_v23 = vmax.f32 %v2120_v19, 0.0  ;;  %v2135_v24 = vadd.f32 %v3751_v21, %v4448_v49  ;;  %v1405_v26 = vadd.f32 %v4492_v37, %v3707_v20 }
 0x1ba   : > { %v1399_v27 = vpop.f32.mrf.mxu0  ;;  %v2129_v28 = vpop.f32.mrf.mxu1 }
 0x1bb   : > { %2830 = vst.msk [vmem:[%s4459_s10 + $0x70] sm:$0xff] %vm364_vm1, %v2702_v23  ;;  %v2705_v29 = vmax.f32 %v2135_v24, 0.0  ;;  %v1400_v30 = vadd.f32 %v4492_v37, %v1399_v27  ;;  %v2130_v31 = vadd.f32 %v4448_v49, %v2129_v28  ;;  %3896 = vmatprep.mubr.msk.f32.mxu1 %vm1594_vm3, %v1572_v22  ;;  %v1575_v38 = vmax.f32 %v1405_v26, 0.0 }
 0x1bc   : > { %v3710_v32 = vpop.f32.mrf.mxu0  ;;  %v3754_v33 = vpop.f32.mrf.mxu1  ;;  %3897 = vmatmul.mubr.msk.f32.gmra.mxu1 %vm1594_vm3, %v1573_v25 }
 0x1bd   : > { %2833 = vst.msk [vmem:[%s4459_s10 + $0x88] sm:$0xff] %vm364_vm1, %v2705_v29  ;;  %v1574_v34 = vmax.f32 %v1400_v30, 0.0  ;;  %v2704_v35 = vmax.f32 %v2130_v31, 0.0  ;;  %v2145_v36 = vadd.f32 %v3754_v33, %v4448_v49  ;;  %v1415_v39 = vadd.f32 %v4492_v37, %v3710_v32 }
 0x1be   : > { %v1409_v40 = vpop.f32.mrf.mxu0  ;;  %v2139_v41 = vpop.f32.mrf.mxu1 }
 0x1bf   : > { %2832 = vst.msk [vmem:[%s4459_s10 + $0x80] sm:$0xff] %vm364_vm1, %v2704_v35  ;;  %v2707_v42 = vmax.f32 %v2145_v36, 0.0  ;;  %v1410_v43 = vadd.f32 %v4492_v37, %v1409_v40  ;;  %v2140_v44 = vadd.f32 %v4448_v49, %v2139_v41  ;;  %3899 = vmatprep.mubr.msk.f32.mxu1 %vm1594_vm3, %v1574_v34  ;;  %v1577_v51 = vmax.f32 %v1415_v39, 0.0 }
 0x1c0   : > { %v3713_v45 = vpop.f32.mrf.mxu0  ;;  %v3757_v46 = vpop.f32.mrf.mxu1  ;;  %3900 = vmatmul.mubr.msk.f32.gmra.mxu1 %vm1594_vm3, %v1575_v38 }
 0x1c1   : > { %2835 = vst.msk [vmem:[%s4459_s10 + $0x98] sm:$0xff] %vm364_vm1, %v2707_v42  ;;  %v1576_v47 = vmax.f32 %v1410_v43, 0.0  ;;  %v2706_v48 = vmax.f32 %v2140_v44, 0.0  ;;  %v2155_v50 = vadd.f32 %v3757_v46, %v4448_v49  ;;  %v1425_v52 = vadd.f32 %v4492_v37, %v3713_v45 }
 0x1c2   : > { %v1419_v53 = vpop.f32.mrf.mxu0  ;;  %v2149_v54 = vpop.f32.mrf.mxu1 }
 0x1c3   : > { %2834 = vst.msk [vmem:[%s4459_s10 + $0x90] sm:$0xff] %vm364_vm1, %v2706_v48  ;;  %v2709_v55 = vmax.f32 %v2155_v50, 0.0  ;;  %v1420_v56 = vadd.f32 %v4492_v37, %v1419_v53  ;;  %v2150_v57 = vadd.f32 %v4448_v49, %v2149_v54  ;;  %3902 = vmatprep.mubr.msk.f32.mxu1 %vm1594_vm3, %v1576_v47  ;;  %v1579_v63 = vmax.f32 %v1425_v52, 0.0 }
 0x1c4   : > { %v3716_v58 = vpop.f32.mrf.mxu0  ;;  %v3760_v59 = vpop.f32.mrf.mxu1  ;;  %3903 = vmatmul.mubr.msk.f32.gmra.mxu1 %vm1594_vm3, %v1577_v51 }
 0x1c5   : > { %2837 = vst.msk [vmem:[%s4459_s10 + $0xa8] sm:$0xff] %vm364_vm1, %v2709_v55  ;;  %v1578_v60 = vmax.f32 %v1420_v56, 0.0  ;;  %v2708_v61 = vmax.f32 %v2150_v57, 0.0  ;;  %v2165_v62 = vadd.f32 %v3760_v59, %v4448_v49  ;;  %v1435_v0 = vadd.f32 %v4492_v37, %v3716_v58 }
 0x1c6   : > { %v1429_v1 = vpop.f32.mrf.mxu0  ;;  %v2159_v2 = vpop.f32.mrf.mxu1 }
 0x1c7   : > { %2836 = vst.msk [vmem:[%s4459_s10 + $0xa0] sm:$0xff] %vm364_vm1, %v2708_v61  ;;  %v2711_v3 = vmax.f32 %v2165_v62, 0.0  ;;  %v1430_v4 = vadd.f32 %v4492_v37, %v1429_v1  ;;  %v2160_v5 = vadd.f32 %v4448_v49, %v2159_v2  ;;  %3905 = vmatprep.mubr.msk.f32.mxu1 %vm1594_vm3, %v1578_v60  ;;  %v1581_v11 = vmax.f32 %v1435_v0, 0.0 }
 0x1c8   : > { %v3719_v6 = vpop.f32.mrf.mxu0  ;;  %v3763_v7 = vpop.f32.mrf.mxu1  ;;  %3906 = vmatmul.mubr.msk.f32.gmra.mxu1 %vm1594_vm3, %v1579_v63 }
 0x1c9   : > { %2839 = vst.msk [vmem:[%s4459_s10 + $0xb8] sm:$0xff] %vm364_vm1, %v2711_v3  ;;  %v1580_v8 = vmax.f32 %v1430_v4, 0.0  ;;  %v2710_v9 = vmax.f32 %v2160_v5, 0.0  ;;  %v2175_v10 = vadd.f32 %v3763_v7, %v4448_v49  ;;  %v1445_v12 = vadd.f32 %v4492_v37, %v3719_v6 }
 0x1ca   : > { %v1439_v13 = vpop.f32.mrf.mxu0  ;;  %v2169_v14 = vpop.f32.mrf.mxu1 }
 0x1cb   : > { %2838 = vst.msk [vmem:[%s4459_s10 + $0xb0] sm:$0xff] %vm364_vm1, %v2710_v9  ;;  %v2713_v15 = vmax.f32 %v2175_v10, 0.0  ;;  %v1440_v16 = vadd.f32 %v4492_v37, %v1439_v13  ;;  %v2170_v17 = vadd.f32 %v4448_v49, %v2169_v14  ;;  %3908 = vmatprep.mubr.msk.f32.mxu1 %vm1594_vm3, %v1580_v8  ;;  %v1583_v23 = vmax.f32 %v1445_v12, 0.0 }
 0x1cc   : > { %v3722_v18 = vpop.f32.mrf.mxu0  ;;  %v3766_v19 = vpop.f32.mrf.mxu1  ;;  %3909 = vmatmul.mubr.msk.f32.gmra.mxu1 %vm1594_vm3, %v1581_v11 }
 0x1cd   : > { %2841 = vst.msk [vmem:[%s4459_s10 + $0xc8] sm:$0xff] %vm364_vm1, %v2713_v15  ;;  %v1582_v20 = vmax.f32 %v1440_v16, 0.0  ;;  %v2712_v21 = vmax.f32 %v2170_v17, 0.0  ;;  %v2185_v22 = vadd.f32 %v3766_v19, %v4448_v49  ;;  %v1455_v24 = vadd.f32 %v4492_v37, %v3722_v18 }
 0x1ce   : > { %v1449_v25 = vpop.f32.mrf.mxu0  ;;  %v2179_v26 = vpop.f32.mrf.mxu1 }
 0x1cf   : > { %2840 = vst.msk [vmem:[%s4459_s10 + $0xc0] sm:$0xff] %vm364_vm1, %v2712_v21  ;;  %v2715_v27 = vmax.f32 %v2185_v22, 0.0  ;;  %v1450_v28 = vadd.f32 %v4492_v37, %v1449_v25  ;;  %v2180_v29 = vadd.f32 %v4448_v49, %v2179_v26  ;;  %3911 = vmatprep.mubr.msk.f32.mxu1 %vm1594_vm3, %v1582_v20  ;;  %v1585_v34 = vmax.f32 %v1455_v24, 0.0 }
 0x1d0   : > { %v3769_v30 = vpop.f32.mrf.mxu1  ;;  %3912 = vmatmul.mubr.msk.f32.gmra.mxu1 %vm1594_vm3, %v1583_v23 }
 0x1d1   : > { %2843 = vst.msk [vmem:[%s4459_s10 + $0xd8] sm:$0xff] %vm364_vm1, %v2715_v27  ;;  %v1584_v31 = vmax.f32 %v1450_v28, 0.0  ;;  %v2714_v32 = vmax.f32 %v2180_v29, 0.0  ;;  %v2195_v33 = vadd.f32 %v3769_v30, %v4448_v49 }
 0x1d2   : > { %v2189_v35 = vpop.f32.mrf.mxu1 }
 0x1d3   : > { %2842 = vst.msk [vmem:[%s4459_s10 + $0xd0] sm:$0xff] %vm364_vm1, %v2714_v32  ;;  %v2717_v37 = vmax.f32 %v2195_v33, 0.0  ;;  %v2190_v36 = vadd.f32 %v4448_v49, %v2189_v35  ;;  %3914 = vmatprep.mubr.msk.f32.mxu1 %vm1594_vm3, %v1584_v31 }
 0x1d4   : > { %v3772_v38 = vpop.f32.mrf.mxu1  ;;  %3915 = vmatmul.mubr.msk.f32.gmra.mxu1 %vm1594_vm3, %v1585_v34 }
 0x1d5   : > { %2845 = vst.msk [vmem:[%s4459_s10 + $0xe8] sm:$0xff] %vm364_vm1, %v2717_v37  ;;  %v2716_v39 = vmax.f32 %v2190_v36, 0.0  ;;  %v2205_v40 = vadd.f32 %v3772_v38, %v4448_v49 }
 0x1d6   : > { %v2199_v41 = vpop.f32.mrf.mxu1 }
 0x1d7   : > { %2844 = vst.msk [vmem:[%s4459_s10 + $0xe0] sm:$0xff] %vm364_vm1, %v2716_v39  ;;  %v2719_v42 = vmax.f32 %v2205_v40, 0.0  ;;  %v2200_v43 = vadd.f32 %v4448_v49, %v2199_v41 }
 0x1d8   : > { %v3775_v44 = vpop.f32.mrf.mxu1 }
 0x1d9   : > { %2847 = vst.msk [vmem:[%s4459_s10 + $0xf8] sm:$0xff] %vm364_vm1, %v2719_v42  ;;  %v2718_v45 = vmax.f32 %v2200_v43, 0.0  ;;  %v2215_v46 = vadd.f32 %v3775_v44, %v4448_v49 }
 0x1da   : > { %v2209_v47 = vpop.f32.mrf.mxu1 }
 0x1db   : > { %2846 = vst.msk [vmem:[%s4459_s10 + $0xf0] sm:$0xff] %vm364_vm1, %v2718_v45  ;;  %v2721_v48 = vmax.f32 %v2215_v46, 0.0  ;;  %v2210_v50 = vadd.f32 %v4448_v49, %v2209_v47 }
 0x1dc   : > { %v3778_v51 = vpop.f32.mrf.mxu1 }
 0x1dd   : > { %2849 = vst.msk [vmem:[%s4459_s10 + $0x108] sm:$0xff] %vm364_vm1, %v2721_v48  ;;  %v2720_v52 = vmax.f32 %v2210_v50, 0.0  ;;  %v2225_v53 = vadd.f32 %v3778_v51, %v4448_v49 }
 0x1de   : > { %v2219_v54 = vpop.f32.mrf.mxu1 }
 0x1df   : > { %2848 = vst.msk [vmem:[%s4459_s10 + $0x100] sm:$0xff] %vm364_vm1, %v2720_v52  ;;  %v2723_v55 = vmax.f32 %v2225_v53, 0.0  ;;  %v2220_v56 = vadd.f32 %v4448_v49, %v2219_v54 }
 0x1e0   : > { %v3781_v57 = vpop.f32.mrf.mxu1 }
 0x1e1   : > { %2851 = vst.msk [vmem:[%s4459_s10 + $0x118] sm:$0xff] %vm364_vm1, %v2723_v55  ;;  %v2722_v58 = vmax.f32 %v2220_v56, 0.0  ;;  %v2235_v59 = vadd.f32 %v3781_v57, %v4448_v49 }
 0x1e2   : > { %v2229_v60 = vpop.f32.mrf.mxu1 }
 0x1e3   : > { %2850 = vst.msk [vmem:[%s4459_s10 + $0x110] sm:$0xff] %vm364_vm1, %v2722_v58  ;;  %v2725_v61 = vmax.f32 %v2235_v59, 0.0  ;;  %v2230_v62 = vadd.f32 %v4448_v49, %v2229_v60 }
 0x1e4   : > { %v3784_v63 = vpop.f32.mrf.mxu1 }
 0x1e5   : > { %2853 = vst.msk [vmem:[%s4459_s10 + $0x128] sm:$0xff] %vm364_vm1, %v2725_v61  ;;  %v2724_v0 = vmax.f32 %v2230_v62, 0.0  ;;  %v2245_v1 = vadd.f32 %v3784_v63, %v4448_v49 }
 0x1e6   : > { %v2239_v2 = vpop.f32.mrf.mxu1 }
 0x1e7   : > { %2852 = vst.msk [vmem:[%s4459_s10 + $0x120] sm:$0xff] %vm364_vm1, %v2724_v0  ;;  %v2727_v3 = vmax.f32 %v2245_v1, 0.0  ;;  %v2240_v4 = vadd.f32 %v4448_v49, %v2239_v2 }
 0x1e8   : > { %v3787_v5 = vpop.f32.mrf.mxu1 }
 0x1e9   : > { %2855 = vst.msk [vmem:[%s4459_s10 + $0x138] sm:$0xff] %vm364_vm1, %v2727_v3  ;;  %v2726_v6 = vmax.f32 %v2240_v4, 0.0  ;;  %v2255_v7 = vadd.f32 %v3787_v5, %v4448_v49 }
 0x1ea   : > { %v2249_v8 = vpop.f32.mrf.mxu1 }
 0x1eb   : > { %2854 = vst.msk [vmem:[%s4459_s10 + $0x130] sm:$0xff] %vm364_vm1, %v2726_v6  ;;  %v2729_v9 = vmax.f32 %v2255_v7, 0.0  ;;  %v2250_v10 = vadd.f32 %v4448_v49, %v2249_v8 }
 0x1ec   : > { %v3790_v11 = vpop.f32.mrf.mxu1 }
 0x1ed   : > { %2857 = vst.msk [vmem:[%s4459_s10 + $0x148] sm:$0xff] %vm364_vm1, %v2729_v9  ;;  %v2728_v12 = vmax.f32 %v2250_v10, 0.0  ;;  %v2265_v13 = vadd.f32 %v3790_v11, %v4448_v49 }
 0x1ee   : > { %v2259_v14 = vpop.f32.mrf.mxu1 }
 0x1ef   : > { %2856 = vst.msk [vmem:[%s4459_s10 + $0x140] sm:$0xff] %vm364_vm1, %v2728_v12  ;;  %v2731_v15 = vmax.f32 %v2265_v13, 0.0  ;;  %v2260_v16 = vadd.f32 %v4448_v49, %v2259_v14 }
 0x1f0   : > { %v3793_v17 = vpop.f32.mrf.mxu1 }
 0x1f1   : > { %2859 = vst.msk [vmem:[%s4459_s10 + $0x158] sm:$0xff] %vm364_vm1, %v2731_v15  ;;  %v2730_v18 = vmax.f32 %v2260_v16, 0.0  ;;  %v2275_v19 = vadd.f32 %v3793_v17, %v4448_v49 }
 0x1f2   : > { %v2269_v20 = vpop.f32.mrf.mxu1 }
 0x1f3   : > { %2858 = vst.msk [vmem:[%s4459_s10 + $0x150] sm:$0xff] %vm364_vm1, %v2730_v18  ;;  %v2733_v21 = vmax.f32 %v2275_v19, 0.0  ;;  %v2270_v22 = vadd.f32 %v4448_v49, %v2269_v20 }
 0x1f4   : > { %v3796_v23 = vpop.f32.mrf.mxu1 }
 0x1f5   : > { %2861 = vst.msk [vmem:[%s4459_s10 + $0x168] sm:$0xff] %vm364_vm1, %v2733_v21  ;;  %v2732_v24 = vmax.f32 %v2270_v22, 0.0  ;;  %v2285_v25 = vadd.f32 %v3796_v23, %v4448_v49 }
 0x1f6   : > { %v2279_v26 = vpop.f32.mrf.mxu1 }
 0x1f7   : > { %2860 = vst.msk [vmem:[%s4459_s10 + $0x160] sm:$0xff] %vm364_vm1, %v2732_v24  ;;  %v2735_v27 = vmax.f32 %v2285_v25, 0.0  ;;  %v2280_v28 = vadd.f32 %v4448_v49, %v2279_v26 }
 0x1f8   : > { %v3799_v29 = vpop.f32.mrf.mxu1 }
 0x1f9   : > { %2863 = vst.msk [vmem:[%s4459_s10 + $0x178] sm:$0xff] %vm364_vm1, %v2735_v27  ;;  %v2734_v30 = vmax.f32 %v2280_v28, 0.0  ;;  %v2295_v31 = vadd.f32 %v3799_v29, %v4448_v49 }
 0x1fa   : > { %v2289_v32 = vpop.f32.mrf.mxu1 }
 0x1fb   : > { %2862 = vst.msk [vmem:[%s4459_s10 + $0x170] sm:$0xff] %vm364_vm1, %v2734_v30  ;;  %v2737_v33 = vmax.f32 %v2295_v31, 0.0  ;;  %v2290_v34 = vadd.f32 %v4448_v49, %v2289_v32 }
 0x1fc   : > { %v3802_v35 = vpop.f32.mrf.mxu1 }
 0x1fd   : > { %2865 = vst.msk [vmem:[%s4459_s10 + $0x188] sm:$0xff] %vm364_vm1, %v2737_v33  ;;  %v2736_v37 = vmax.f32 %v2290_v34, 0.0  ;;  %v2305_v36 = vadd.f32 %v3802_v35, %v4448_v49 }
 0x1fe   : > { %v2299_v38 = vpop.f32.mrf.mxu1 }
 0x1ff   : > { %2864 = vst.msk [vmem:[%s4459_s10 + $0x180] sm:$0xff] %vm364_vm1, %v2736_v37  ;;  %v2739_v39 = vmax.f32 %v2305_v36, 0.0  ;;  %v2300_v40 = vadd.f32 %v4448_v49, %v2299_v38 }
 0x200   : > { %v3805_v41 = vpop.f32.mrf.mxu1 }
 0x201   : > { %2867 = vst.msk [vmem:[%s4459_s10 + $0x198] sm:$0xff] %vm364_vm1, %v2739_v39  ;;  %v2738_v42 = vmax.f32 %v2300_v40, 0.0  ;;  %v2315_v43 = vadd.f32 %v3805_v41, %v4448_v49 }
 0x202   : > { %v2309_v44 = vpop.f32.mrf.mxu1 }
 0x203   : > { %2866 = vst.msk [vmem:[%s4459_s10 + $0x190] sm:$0xff] %vm364_vm1, %v2738_v42  ;;  %v2741_v45 = vmax.f32 %v2315_v43, 0.0  ;;  %v2310_v46 = vadd.f32 %v4448_v49, %v2309_v44 }
 0x204   : > { %v3808_v47 = vpop.f32.mrf.mxu1 }
 0x205   : > { %2869 = vst.msk [vmem:[%s4459_s10 + $0x1a8] sm:$0xff] %vm364_vm1, %v2741_v45  ;;  %v2740_v48 = vmax.f32 %v2310_v46, 0.0  ;;  %v2325_v50 = vadd.f32 %v3808_v47, %v4448_v49 }
 0x206   : > { %v2319_v51 = vpop.f32.mrf.mxu1 }
 0x207   : > { %2868 = vst.msk [vmem:[%s4459_s10 + $0x1a0] sm:$0xff] %vm364_vm1, %v2740_v48  ;;  %v2743_v52 = vmax.f32 %v2325_v50, 0.0  ;;  %v2320_v53 = vadd.f32 %v4448_v49, %v2319_v51 }
 0x208   : > { %v3811_v54 = vpop.f32.mrf.mxu1 }
 0x209   : > { %2871 = vst.msk [vmem:[%s4459_s10 + $0x1b8] sm:$0xff] %vm364_vm1, %v2743_v52  ;;  %v2742_v55 = vmax.f32 %v2320_v53, 0.0  ;;  %v2335_v56 = vadd.f32 %v3811_v54, %v4448_v49 }
 0x20a   : > { %v2329_v57 = vpop.f32.mrf.mxu1 }
 0x20b   : > { %2870 = vst.msk [vmem:[%s4459_s10 + $0x1b0] sm:$0xff] %vm364_vm1, %v2742_v55  ;;  %v2745_v58 = vmax.f32 %v2335_v56, 0.0  ;;  %v2330_v59 = vadd.f32 %v4448_v49, %v2329_v57 }
 0x20c   : > { %v3814_v60 = vpop.f32.mrf.mxu1 }
 0x20d   : > { %2873 = vst.msk [vmem:[%s4459_s10 + $0x1c8] sm:$0xff] %vm364_vm1, %v2745_v58  ;;  %v2744_v61 = vmax.f32 %v2330_v59, 0.0  ;;  %v2345_v62 = vadd.f32 %v3814_v60, %v4448_v49 }
 0x20e   : > { %v2339_v63 = vpop.f32.mrf.mxu1 }
 0x20f   : > { %2872 = vst.msk [vmem:[%s4459_s10 + $0x1c0] sm:$0xff] %vm364_vm1, %v2744_v61  ;;  %v2747_v0 = vmax.f32 %v2345_v62, 0.0  ;;  %v2340_v1 = vadd.f32 %v4448_v49, %v2339_v63 }
 0x210   : > { %v3817_v2 = vpop.f32.mrf.mxu1 }
 0x211   : > { %2875 = vst.msk [vmem:[%s4459_s10 + $0x1d8] sm:$0xff] %vm364_vm1, %v2747_v0  ;;  %v2746_v3 = vmax.f32 %v2340_v1, 0.0  ;;  %v2355_v4 = vadd.f32 %v3817_v2, %v4448_v49 }
 0x212   : > { %v2349_v5 = vpop.f32.mrf.mxu1 }
 0x213   : > { %2874 = vst.msk [vmem:[%s4459_s10 + $0x1d0] sm:$0xff] %vm364_vm1, %v2746_v3  ;;  %v2749_v6 = vmax.f32 %v2355_v4, 0.0  ;;  %v2350_v7 = vadd.f32 %v4448_v49, %v2349_v5 }
 0x214   : > { %v3820_v8 = vpop.f32.mrf.mxu1 }
 0x215   : > { %2877 = vst.msk [vmem:[%s4459_s10 + $0x1e8] sm:$0xff] %vm364_vm1, %v2749_v6  ;;  %v2748_v9 = vmax.f32 %v2350_v7, 0.0  ;;  %v2365_v10 = vadd.f32 %v3820_v8, %v4448_v49 }
 0x216   : > { %v2359_v11 = vpop.f32.mrf.mxu1 }
 0x217   : > { %2876 = vst.msk [vmem:[%s4459_s10 + $0x1e0] sm:$0xff] %vm364_vm1, %v2748_v9  ;;  %v2751_v12 = vmax.f32 %v2365_v10, 0.0  ;;  %v2360_v13 = vadd.f32 %v4448_v49, %v2359_v11 }
 0x218   : > { %v3823_v14 = vpop.f32.mrf.mxu1 }
 0x219   : > { %2879 = vst.msk [vmem:[%s4459_s10 + $0x1f8] sm:$0xff] %vm364_vm1, %v2751_v12  ;;  %v2750_v15 = vmax.f32 %v2360_v13, 0.0  ;;  %v2375_v16 = vadd.f32 %v3823_v14, %v4448_v49 }
 0x21a   : > { %v2369_v17 = vpop.f32.mrf.mxu1 }
 0x21b   : > { %2878 = vst.msk [vmem:[%s4459_s10 + $0x1f0] sm:$0xff] %vm364_vm1, %v2750_v15  ;;  %v2753_v18 = vmax.f32 %v2375_v16, 0.0  ;;  %v2370_v19 = vadd.f32 %v4448_v49, %v2369_v17 }
 0x21c   : > { %v3826_v20 = vpop.f32.mrf.mxu1 }
 0x21d   : > { %2881 = vst.msk [vmem:[%s4459_s10 + $0x208] sm:$0xff] %vm364_vm1, %v2753_v18  ;;  %v2752_v21 = vmax.f32 %v2370_v19, 0.0  ;;  %v2385_v22 = vadd.f32 %v3826_v20, %v4448_v49 }
 0x21e   : > { %v2379_v23 = vpop.f32.mrf.mxu1 }
 0x21f   : > { %2880 = vst.msk [vmem:[%s4459_s10 + $0x200] sm:$0xff] %vm364_vm1, %v2752_v21  ;;  %v2755_v24 = vmax.f32 %v2385_v22, 0.0  ;;  %v2380_v25 = vadd.f32 %v4448_v49, %v2379_v23 }
 0x220   : > { %v3829_v26 = vpop.f32.mrf.mxu1 }
 0x221   : > { %2883 = vst.msk [vmem:[%s4459_s10 + $0x218] sm:$0xff] %vm364_vm1, %v2755_v24  ;;  %v2754_v27 = vmax.f32 %v2380_v25, 0.0  ;;  %v2395_v28 = vadd.f32 %v3829_v26, %v4448_v49 }
 0x222   : > { %v2389_v29 = vpop.f32.mrf.mxu1 }
 0x223   : > { %2882 = vst.msk [vmem:[%s4459_s10 + $0x210] sm:$0xff] %vm364_vm1, %v2754_v27  ;;  %v2757_v30 = vmax.f32 %v2395_v28, 0.0  ;;  %v2390_v31 = vadd.f32 %v4448_v49, %v2389_v29 }
 0x224   : > { %v3832_v32 = vpop.f32.mrf.mxu1 }
 0x225   : > { %2885 = vst.msk [vmem:[%s4459_s10 + $0x228] sm:$0xff] %vm364_vm1, %v2757_v30  ;;  %v2756_v33 = vmax.f32 %v2390_v31, 0.0  ;;  %v2405_v34 = vadd.f32 %v3832_v32, %v4448_v49 }
 0x226   : > { %v2399_v35 = vpop.f32.mrf.mxu1 }
 0x227   : > { %2884 = vst.msk [vmem:[%s4459_s10 + $0x220] sm:$0xff] %vm364_vm1, %v2756_v33  ;;  %v2759_v37 = vmax.f32 %v2405_v34, 0.0  ;;  %v2400_v36 = vadd.f32 %v4448_v49, %v2399_v35 }
 0x228   : > { %v3835_v38 = vpop.f32.mrf.mxu1 }
 0x229   : > { %2887 = vst.msk [vmem:[%s4459_s10 + $0x238] sm:$0xff] %vm364_vm1, %v2759_v37  ;;  %v2758_v39 = vmax.f32 %v2400_v36, 0.0  ;;  %v2415_v40 = vadd.f32 %v3835_v38, %v4448_v49 }
 0x22a   : > { %v2409_v41 = vpop.f32.mrf.mxu1 }
 0x22b   : > { %2886 = vst.msk [vmem:[%s4459_s10 + $0x230] sm:$0xff] %vm364_vm1, %v2758_v39  ;;  %v2761_v42 = vmax.f32 %v2415_v40, 0.0  ;;  %v2410_v43 = vadd.f32 %v4448_v49, %v2409_v41 }
 0x22c   : > { %v3838_v44 = vpop.f32.mrf.mxu1 }
 0x22d   : > { %2889 = vst.msk [vmem:[%s4459_s10 + $0x248] sm:$0xff] %vm364_vm1, %v2761_v42  ;;  %v2760_v45 = vmax.f32 %v2410_v43, 0.0  ;;  %v2425_v46 = vadd.f32 %v3838_v44, %v4448_v49 }
 0x22e   : > { %v2419_v47 = vpop.f32.mrf.mxu1 }
 0x22f   : > { %2888 = vst.msk [vmem:[%s4459_s10 + $0x240] sm:$0xff] %vm364_vm1, %v2760_v45  ;;  %v2763_v48 = vmax.f32 %v2425_v46, 0.0  ;;  %v2420_v50 = vadd.f32 %v4448_v49, %v2419_v47 }
 0x230   : > { %v3841_v51 = vpop.f32.mrf.mxu1 }
 0x231   : > { %2891 = vst.msk [vmem:[%s4459_s10 + $0x258] sm:$0xff] %vm364_vm1, %v2763_v48  ;;  %v2762_v52 = vmax.f32 %v2420_v50, 0.0  ;;  %v2435_v53 = vadd.f32 %v3841_v51, %v4448_v49 }
 0x232   : > { %v2429_v54 = vpop.f32.mrf.mxu1 }
 0x233   : > { %2890 = vst.msk [vmem:[%s4459_s10 + $0x250] sm:$0xff] %vm364_vm1, %v2762_v52  ;;  %v2765_v55 = vmax.f32 %v2435_v53, 0.0  ;;  %v2430_v56 = vadd.f32 %v4448_v49, %v2429_v54 }
 0x234   : > { %v3844_v57 = vpop.f32.mrf.mxu1 }
 0x235   : > { %2893 = vst.msk [vmem:[%s4459_s10 + $0x268] sm:$0xff] %vm364_vm1, %v2765_v55  ;;  %v2764_v58 = vmax.f32 %v2430_v56, 0.0  ;;  %v2445_v59 = vadd.f32 %v3844_v57, %v4448_v49  ;;  %v4818_v56 = vld [vmem:[%s4919_s4] ss:$0 sm:$0xff] }
 0x236   : > { %v2439_v60 = vpop.f32.mrf.mxu1 }
 0x237   : > { %2892 = vst.msk [vmem:[%s4459_s10 + $0x260] sm:$0xff] %vm364_vm1, %v2764_v58  ;;  %v2767_v61 = vmax.f32 %v2445_v59, 0.0  ;;  %v2440_v62 = vadd.f32 %v4448_v49, %v2439_v60 }
 0x238   : > { %v3847_v63 = vpop.f32.mrf.mxu1 }
 0x239   : > { %2895 = vst.msk [vmem:[%s4459_s10 + $0x278] sm:$0xff] %vm364_vm1, %v2767_v61  ;;  %v2766_v0 = vmax.f32 %v2440_v62, 0.0  ;;  %v2455_v1 = vadd.f32 %v3847_v63, %v4448_v49 }
 0x23a   : > { %v2449_v2 = vpop.f32.mrf.mxu1 }
 0x23b   : > { %2894 = vst.msk [vmem:[%s4459_s10 + $0x270] sm:$0xff] %vm364_vm1, %v2766_v0  ;;  %v2769_v3 = vmax.f32 %v2455_v1, 0.0  ;;  %v2450_v4 = vadd.f32 %v4448_v49, %v2449_v2 }
 0x23c   : > { %v3850_v5 = vpop.f32.mrf.mxu1 }
 0x23d   : > { %2897 = vst.msk [vmem:[%s4459_s10 + $0x288] sm:$0xff] %vm364_vm1, %v2769_v3  ;;  %v2768_v6 = vmax.f32 %v2450_v4, 0.0  ;;  %v2465_v7 = vadd.f32 %v3850_v5, %v4448_v49 }
 0x23e   : > { %v2459_v8 = vpop.f32.mrf.mxu1 }
 0x23f   : > { %2896 = vst.msk [vmem:[%s4459_s10 + $0x280] sm:$0xff] %vm364_vm1, %v2768_v6  ;;  %v2771_v9 = vmax.f32 %v2465_v7, 0.0  ;;  %v2460_v10 = vadd.f32 %v4448_v49, %v2459_v8 }
 0x240   : > { %v3853_v11 = vpop.f32.mrf.mxu1 }
 0x241   : > { %2899 = vst.msk [vmem:[%s4459_s10 + $0x298] sm:$0xff] %vm364_vm1, %v2771_v9  ;;  %v2770_v12 = vmax.f32 %v2460_v10, 0.0  ;;  %v2475_v13 = vadd.f32 %v3853_v11, %v4448_v49 }
 0x242   : > { %v2469_v14 = vpop.f32.mrf.mxu1 }
 0x243   : > { %2898 = vst.msk [vmem:[%s4459_s10 + $0x290] sm:$0xff] %vm364_vm1, %v2770_v12  ;;  %v2773_v15 = vmax.f32 %v2475_v13, 0.0  ;;  %v2470_v16 = vadd.f32 %v4448_v49, %v2469_v14 }
 0x244   : > { %v3856_v17 = vpop.f32.mrf.mxu1 }
 0x245   : > { %2901 = vst.msk [vmem:[%s4459_s10 + $0x2a8] sm:$0xff] %vm364_vm1, %v2773_v15  ;;  %v2772_v18 = vmax.f32 %v2470_v16, 0.0  ;;  %v2485_v19 = vadd.f32 %v3856_v17, %v4448_v49 }
 0x246   : > { %v2479_v20 = vpop.f32.mrf.mxu1 }
 0x247   : > { %2900 = vst.msk [vmem:[%s4459_s10 + $0x2a0] sm:$0xff] %vm364_vm1, %v2772_v18  ;;  %v2775_v21 = vmax.f32 %v2485_v19, 0.0  ;;  %v2480_v22 = vadd.f32 %v4448_v49, %v2479_v20 }
 0x248   : > { %v3859_v23 = vpop.f32.mrf.mxu1 }
 0x249   : > { %2903 = vst.msk [vmem:[%s4459_s10 + $0x2b8] sm:$0xff] %vm364_vm1, %v2775_v21  ;;  %v2774_v24 = vmax.f32 %v2480_v22, 0.0  ;;  %v2495_v25 = vadd.f32 %v3859_v23, %v4448_v49 }
 0x24a   : > { %v2489_v26 = vpop.f32.mrf.mxu1 }
 0x24b   : > { %2902 = vst.msk [vmem:[%s4459_s10 + $0x2b0] sm:$0xff] %vm364_vm1, %v2774_v24  ;;  %v2777_v27 = vmax.f32 %v2495_v25, 0.0  ;;  %v2490_v28 = vadd.f32 %v4448_v49, %v2489_v26 }
 0x24c   : > { %v3862_v29 = vpop.f32.mrf.mxu1 }
 0x24d   : > { %2905 = vst.msk [vmem:[%s4459_s10 + $0x2c8] sm:$0xff] %vm364_vm1, %v2777_v27  ;;  %v2776_v30 = vmax.f32 %v2490_v28, 0.0  ;;  %v2505_v31 = vadd.f32 %v3862_v29, %v4448_v49 }
 0x24e   : > { %v2499_v32 = vpop.f32.mrf.mxu1 }
 0x24f   : > { %2904 = vst.msk [vmem:[%s4459_s10 + $0x2c0] sm:$0xff] %vm364_vm1, %v2776_v30  ;;  %v2779_v33 = vmax.f32 %v2505_v31, 0.0  ;;  %v2500_v34 = vadd.f32 %v4448_v49, %v2499_v32 }
 0x250   : > { %v3865_v35 = vpop.f32.mrf.mxu1 }
 0x251   : > { %2907 = vst.msk [vmem:[%s4459_s10 + $0x2d8] sm:$0xff] %vm364_vm1, %v2779_v33  ;;  %v2778_v37 = vmax.f32 %v2500_v34, 0.0  ;;  %v2515_v36 = vadd.f32 %v3865_v35, %v4448_v49 }
 0x252   : > { %v2509_v38 = vpop.f32.mrf.mxu1 }
 0x253   : > { %2906 = vst.msk [vmem:[%s4459_s10 + $0x2d0] sm:$0xff] %vm364_vm1, %v2778_v37  ;;  %v2781_v39 = vmax.f32 %v2515_v36, 0.0  ;;  %v2510_v40 = vadd.f32 %v4448_v49, %v2509_v38 }
 0x254   : > { %v3868_v41 = vpop.f32.mrf.mxu1 }
 0x255   : > { %2909 = vst.msk [vmem:[%s4459_s10 + $0x2e8] sm:$0xff] %vm364_vm1, %v2781_v39  ;;  %v2780_v42 = vmax.f32 %v2510_v40, 0.0  ;;  %v2525_v43 = vadd.f32 %v3868_v41, %v4448_v49 }
 0x256   : > { %v2519_v44 = vpop.f32.mrf.mxu1 }
 0x257   : > { %2908 = vst.msk [vmem:[%s4459_s10 + $0x2e0] sm:$0xff] %vm364_vm1, %v2780_v42  ;;  %v2783_v45 = vmax.f32 %v2525_v43, 0.0  ;;  %v2520_v46 = vadd.f32 %v4448_v49, %v2519_v44 }
 0x258   : > { %v3871_v47 = vpop.f32.mrf.mxu1 }
 0x259   : > { %2911 = vst.msk [vmem:[%s4459_s10 + $0x2f8] sm:$0xff] %vm364_vm1, %v2783_v45  ;;  %v2782_v48 = vmax.f32 %v2520_v46, 0.0  ;;  %v2535_v50 = vadd.f32 %v3871_v47, %v4448_v49 }
 0x25a   : > { %v2529_v51 = vpop.f32.mrf.mxu1 }
 0x25b   : > { %2910 = vst.msk [vmem:[%s4459_s10 + $0x2f0] sm:$0xff] %vm364_vm1, %v2782_v48  ;;  %v2785_v52 = vmax.f32 %v2535_v50, 0.0  ;;  %v2530_v53 = vadd.f32 %v4448_v49, %v2529_v51 }
 0x25c   : > { %v3874_v54 = vpop.f32.mrf.mxu1 }
 0x25d   : > { %2913 = vst.msk [vmem:[%s4459_s10 + $0x308] sm:$0xff] %vm364_vm1, %v2785_v52  ;;  %v2784_v55 = vmax.f32 %v2530_v53, 0.0  ;;  %v2545_v57 = vadd.f32 %v4818_v56, %v3874_v54 }
 0x25e   : > { %v2539_v58 = vpop.f32.mrf.mxu1 }
 0x25f   : > { %2912 = vst.msk [vmem:[%s4459_s10 + $0x300] sm:$0xff] %vm364_vm1, %v2784_v55  ;;  %v2787_v59 = vmax.f32 %v2545_v57, 0.0  ;;  %v2540_v60 = vadd.f32 %v4818_v56, %v2539_v58 }
 0x260   : > { %v3877_v49 = vpop.f32.mrf.mxu1 }
 0x261   : > { %2915 = vst.msk [vmem:[%s4459_s10 + $0x318] sm:$0xff] %vm364_vm1, %v2787_v59  ;;  %v2786_v61 = vmax.f32 %v2540_v60, 0.0  ;;  %v2555_v62 = vadd.f32 %v4818_v56, %v3877_v49 }
 0x262   : > { %v2549_v63 = vpop.f32.mrf.mxu1 }
 0x263   : > { %2914 = vst.msk [vmem:[%s4459_s10 + $0x310] sm:$0xff] %vm364_vm1, %v2786_v61  ;;  %v2789_v0 = vmax.f32 %v2555_v62, 0.0  ;;  %v2550_v1 = vadd.f32 %v4818_v56, %v2549_v63 }
 0x264   : > { %v3880_v2 = vpop.f32.mrf.mxu1 }
 0x265   : > { %2917 = vst.msk [vmem:[%s4459_s10 + $0x328] sm:$0xff] %vm364_vm1, %v2789_v0  ;;  %v2788_v3 = vmax.f32 %v2550_v1, 0.0  ;;  %v2565_v4 = vadd.f32 %v4818_v56, %v3880_v2 }
 0x266   : > { %v2559_v5 = vpop.f32.mrf.mxu1 }
 0x267   : > { %2916 = vst.msk [vmem:[%s4459_s10 + $0x320] sm:$0xff] %vm364_vm1, %v2788_v3  ;;  %v2791_v6 = vmax.f32 %v2565_v4, 0.0  ;;  %v2560_v7 = vadd.f32 %v4818_v56, %v2559_v5 }
 0x268   : > { %v3883_v8 = vpop.f32.mrf.mxu1 }
 0x269   : > { %2919 = vst.msk [vmem:[%s4459_s10 + $0x338] sm:$0xff] %vm364_vm1, %v2791_v6  ;;  %v2790_v9 = vmax.f32 %v2560_v7, 0.0  ;;  %v2575_v10 = vadd.f32 %v4818_v56, %v3883_v8 }
 0x26a   : > { %v2569_v11 = vpop.f32.mrf.mxu1 }
 0x26b   : > { %2918 = vst.msk [vmem:[%s4459_s10 + $0x330] sm:$0xff] %vm364_vm1, %v2790_v9  ;;  %v2793_v12 = vmax.f32 %v2575_v10, 0.0  ;;  %v2570_v13 = vadd.f32 %v4818_v56, %v2569_v11 }
 0x26c   : > { %v3886_v14 = vpop.f32.mrf.mxu1 }
 0x26d   : > { %2921 = vst.msk [vmem:[%s4459_s10 + $0x348] sm:$0xff] %vm364_vm1, %v2793_v12  ;;  %v2792_v15 = vmax.f32 %v2570_v13, 0.0  ;;  %v2585_v16 = vadd.f32 %v4818_v56, %v3886_v14 }
 0x26e   : > { %v2579_v17 = vpop.f32.mrf.mxu1 }
 0x26f   : > { %2920 = vst.msk [vmem:[%s4459_s10 + $0x340] sm:$0xff] %vm364_vm1, %v2792_v15  ;;  %v2795_v18 = vmax.f32 %v2585_v16, 0.0  ;;  %v2580_v19 = vadd.f32 %v4818_v56, %v2579_v17 }
 0x270   : > { %v3889_v20 = vpop.f32.mrf.mxu1 }
 0x271   : > { %2923 = vst.msk [vmem:[%s4459_s10 + $0x358] sm:$0xff] %vm364_vm1, %v2795_v18  ;;  %v2794_v21 = vmax.f32 %v2580_v19, 0.0  ;;  %v2595_v22 = vadd.f32 %v4818_v56, %v3889_v20 }
 0x272   : > { %v2589_v23 = vpop.f32.mrf.mxu1 }
 0x273   : > { %2922 = vst.msk [vmem:[%s4459_s10 + $0x350] sm:$0xff] %vm364_vm1, %v2794_v21  ;;  %v2797_v24 = vmax.f32 %v2595_v22, 0.0  ;;  %v2590_v25 = vadd.f32 %v4818_v56, %v2589_v23 }
 0x274   : > { %v3892_v26 = vpop.f32.mrf.mxu1 }
 0x275   : > { %2925 = vst.msk [vmem:[%s4459_s10 + $0x368] sm:$0xff] %vm364_vm1, %v2797_v24  ;;  %v2796_v27 = vmax.f32 %v2590_v25, 0.0  ;;  %v2605_v28 = vadd.f32 %v4818_v56, %v3892_v26 }
 0x276   : > { %v2599_v29 = vpop.f32.mrf.mxu1 }
 0x277   : > { %2924 = vst.msk [vmem:[%s4459_s10 + $0x360] sm:$0xff] %vm364_vm1, %v2796_v27  ;;  %v2799_v30 = vmax.f32 %v2605_v28, 0.0  ;;  %v2600_v31 = vadd.f32 %v4818_v56, %v2599_v29 }
 0x278   : > { %v3895_v32 = vpop.f32.mrf.mxu1 }
 0x279   : > { %2927 = vst.msk [vmem:[%s4459_s10 + $0x378] sm:$0xff] %vm364_vm1, %v2799_v30  ;;  %v2798_v33 = vmax.f32 %v2600_v31, 0.0  ;;  %v2615_v34 = vadd.f32 %v4818_v56, %v3895_v32 }
 0x27a   : > { %v2609_v35 = vpop.f32.mrf.mxu1 }
 0x27b   : > { %2926 = vst.msk [vmem:[%s4459_s10 + $0x370] sm:$0xff] %vm364_vm1, %v2798_v33  ;;  %v2801_v37 = vmax.f32 %v2615_v34, 0.0  ;;  %v2610_v36 = vadd.f32 %v4818_v56, %v2609_v35 }
 0x27c   : > { %v3898_v38 = vpop.f32.mrf.mxu1 }
 0x27d   : > { %2929 = vst.msk [vmem:[%s4459_s10 + $0x388] sm:$0xff] %vm364_vm1, %v2801_v37  ;;  %v2800_v39 = vmax.f32 %v2610_v36, 0.0  ;;  %v2625_v40 = vadd.f32 %v4818_v56, %v3898_v38 }
 0x27e   : > { %v2619_v41 = vpop.f32.mrf.mxu1 }
 0x27f   : > { %2928 = vst.msk [vmem:[%s4459_s10 + $0x380] sm:$0xff] %vm364_vm1, %v2800_v39  ;;  %v2803_v42 = vmax.f32 %v2625_v40, 0.0  ;;  %v2620_v43 = vadd.f32 %v4818_v56, %v2619_v41 }
 0x280   : > { %v3901_v44 = vpop.f32.mrf.mxu1 }
 0x281   : > { %2931 = vst.msk [vmem:[%s4459_s10 + $0x398] sm:$0xff] %vm364_vm1, %v2803_v42  ;;  %v2802_v45 = vmax.f32 %v2620_v43, 0.0  ;;  %v2635_v46 = vadd.f32 %v4818_v56, %v3901_v44 }
 0x282   : > { %v2629_v47 = vpop.f32.mrf.mxu1 }
 0x283   : > { %2930 = vst.msk [vmem:[%s4459_s10 + $0x390] sm:$0xff] %vm364_vm1, %v2802_v45  ;;  %v2805_v48 = vmax.f32 %v2635_v46, 0.0  ;;  %v2630_v50 = vadd.f32 %v4818_v56, %v2629_v47 }
 0x284   : > { %v3904_v51 = vpop.f32.mrf.mxu1 }
 0x285   : > { %2933 = vst.msk [vmem:[%s4459_s10 + $0x3a8] sm:$0xff] %vm364_vm1, %v2805_v48  ;;  %v2804_v52 = vmax.f32 %v2630_v50, 0.0  ;;  %v2645_v53 = vadd.f32 %v4818_v56, %v3904_v51 }
 0x286   : > { %v2639_v54 = vpop.f32.mrf.mxu1 }
 0x287   : > { %2932 = vst.msk [vmem:[%s4459_s10 + $0x3a0] sm:$0xff] %vm364_vm1, %v2804_v52  ;;  %v2807_v55 = vmax.f32 %v2645_v53, 0.0  ;;  %v2640_v57 = vadd.f32 %v4818_v56, %v2639_v54 }
 0x288   : > { %v3907_v58 = vpop.f32.mrf.mxu1 }
 0x289   : > { %2935 = vst.msk [vmem:[%s4459_s10 + $0x3b8] sm:$0xff] %vm364_vm1, %v2807_v55  ;;  %v2806_v59 = vmax.f32 %v2640_v57, 0.0  ;;  %v2655_v60 = vadd.f32 %v4818_v56, %v3907_v58 }
 0x28a   : > { %v2649_v49 = vpop.f32.mrf.mxu1 }
 0x28b   : > { %2934 = vst.msk [vmem:[%s4459_s10 + $0x3b0] sm:$0xff] %vm364_vm1, %v2806_v59  ;;  %v2809_v61 = vmax.f32 %v2655_v60, 0.0  ;;  %v2650_v62 = vadd.f32 %v4818_v56, %v2649_v49 }
 0x28c   : > { %v3910_v63 = vpop.f32.mrf.mxu1 }
 0x28d   : > { %2937 = vst.msk [vmem:[%s4459_s10 + $0x3c8] sm:$0xff] %vm364_vm1, %v2809_v61  ;;  %v2808_v0 = vmax.f32 %v2650_v62, 0.0  ;;  %v2665_v1 = vadd.f32 %v4818_v56, %v3910_v63 }
 0x28e   : > { %v2659_v2 = vpop.f32.mrf.mxu1 }
 0x28f   : > { %2936 = vst.msk [vmem:[%s4459_s10 + $0x3c0] sm:$0xff] %vm364_vm1, %v2808_v0  ;;  %v2811_v3 = vmax.f32 %v2665_v1, 0.0  ;;  %v2660_v4 = vadd.f32 %v4818_v56, %v2659_v2 }
 0x290   : > { %v3913_v5 = vpop.f32.mrf.mxu1 }
 0x291   : > { %2939 = vst.msk [vmem:[%s4459_s10 + $0x3d8] sm:$0xff] %vm364_vm1, %v2811_v3  ;;  %v2810_v6 = vmax.f32 %v2660_v4, 0.0  ;;  %v2675_v7 = vadd.f32 %v4818_v56, %v3913_v5 }
 0x292   : > { %v2669_v8 = vpop.f32.mrf.mxu1 }
 0x293   : > { %2938 = vst.msk [vmem:[%s4459_s10 + $0x3d0] sm:$0xff] %vm364_vm1, %v2810_v6  ;;  %v2813_v9 = vmax.f32 %v2675_v7, 0.0  ;;  %v2670_v10 = vadd.f32 %v4818_v56, %v2669_v8 }
 0x294   : > { %v3916_v11 = vpop.f32.mrf.mxu1 }
 0x295   : > { %2941 = vst.msk [vmem:[%s4459_s10 + $0x3e8] sm:$0xff] %vm364_vm1, %v2813_v9  ;;  %v2812_v12 = vmax.f32 %v2670_v10, 0.0  ;;  %v2685_v13 = vadd.f32 %v4818_v56, %v3916_v11 }
 0x296   : > { %v2679_v14 = vpop.f32.mrf.mxu1 }
 0x297   : > { %2940 = vst.msk [vmem:[%s4459_s10 + $0x3e0] sm:$0xff] %vm364_vm1, %v2812_v12  ;;  %v2815_v15 = vmax.f32 %v2685_v13, 0.0  ;;  %v2680_v16 = vadd.f32 %v4818_v56, %v2679_v14 }
 0x299   : > { %2943 = vst.msk [vmem:[%s4459_s10 + $0x3f8] sm:$0xff] %vm364_vm1, %v2815_v15  ;;  %v2814_v17 = vmax.f32 %v2680_v16, 0.0 }
 0x29b   : > { %2942 = vst.msk [vmem:[%s4459_s10 + $0x3f0] sm:$0xff] %vm364_vm1, %v2814_v17 }
 0x29c PF: > { %s15_s18 = sadd.s32 1, %s3933_s18  }
 0x29d   : > { %p12_p4 = scmp.ge.s32.totalorder %s15_s18, 6  }
 0x29f   :  { %14 = sbr.rel (!%p12_p4) target bundleno = 1 (0x1), region = 70 }

</bundles_post_ra>
